<compile_context>
chip_gen: v7x
topology: tpu7x:2x2x1
jax: 0.10.0
libtpu: 0.0.40
codegen_flags: <defaults>
</compile_context>

<pallas_src>
import math

import jax
import jax.numpy as jnp
from jax.experimental import pallas as pl
from jax.experimental.pallas import tpu as pltpu

EMBED_DIM = 64
NUM_HEADS = 2
HIDDEN_DIM = 128
HEAD_DIM = EMBED_DIM // NUM_HEADS
SCALE = 1.0 / math.sqrt(HEAD_DIM)
LN_EPS = 1e-5  # nn.LayerNorm default

# Packed-parameter row/slab indices.
W_SA_O, W_CA_Q, W_CA_O = 0, 1, 2                       # (3, E, E) stacked square weights
V128_CA_BKV, V128_FFN_B1 = 0, 1                        # (2, 128) packed 128-wide vectors
(V64_SA_BO, V64_CA_BQ, V64_CA_BO, V64_FFN_B2,
 V64_LN1_G, V64_LN1_B, V64_LN2_G, V64_LN2_B,
 V64_LN3_G, V64_LN3_B) = range(10)                     # (10, 64) packed 64-wide vectors


# ---------------- kernel ----------------
def _build_kernel(matmul_dtype):
    md = matmul_dtype

    def mm(a, b):
        return jnp.dot(a.astype(md), b.astype(md), preferred_element_type=jnp.float32)

    def layernorm(x, vec64, g_row):
        g = vec64[g_row:g_row + 1, :]
        b = vec64[g_row + 1:g_row + 2, :]
        mu = jnp.mean(x, axis=-1, keepdims=True)
        xc = x - mu
        var = jnp.mean(xc * xc, axis=-1, keepdims=True)
        return xc * jax.lax.rsqrt(var + LN_EPS) * g + b

    def split_heads(t2, bt, rows):
        # (bt*rows, E) -> (H*bt, rows, hd); head h lives in leading block [h*bt, (h+1)*bt).
        t3 = t2.reshape(bt, rows, EMBED_DIM)
        return jnp.concatenate(
            [t3[:, :, h * HEAD_DIM:(h + 1) * HEAD_DIM] for h in range(NUM_HEADS)], axis=0)

    def attention(qh, kh, vh, causal):
        # qh: (N, Sq, hd) already scaled by 1/sqrt(hd); kh/vh: (N, Sk, hd); N = heads*batch_tile.
        scores = jnp.einsum('nqd,nkd->nqk', qh.astype(md), kh.astype(md),
                            preferred_element_type=jnp.float32)
        if causal:
            sq, sk = scores.shape[-2], scores.shape[-1]
            row = jax.lax.broadcasted_iota(jnp.int32, (sq, sk), 0)
            col = jax.lax.broadcasted_iota(jnp.int32, (sq, sk), 1)
            scores = jnp.where((col <= row)[None, :, :], scores, -1e30)
        # Reference (training path) subtracts the row max; softmax result is identical.
        scores = scores - jnp.max(scores, axis=-1, keepdims=True)
        p = jnp.exp(scores)
        p = p * pl.reciprocal(jnp.sum(p, axis=-1, keepdims=True), approx=True)
        return jnp.einsum('nqk,nkd->nqd', p.astype(md), vh.astype(md),
                          preferred_element_type=jnp.float32)

    def o_project(ctx, w_sq, bias_row, vec64, bt, rows):
        # ctx: (H*bt, rows, hd); w_sq: (E, E). Accumulate per head through the output projection
        # (sublane-sliced weight rows) instead of lane-concatenating the heads.
        out = vec64[bias_row:bias_row + 1, :]
        for h in range(NUM_HEADS):
            ctx_h = ctx[h * bt:(h + 1) * bt].reshape(bt * rows, HEAD_DIM)
            out = out + mm(ctx_h, w_sq[h * HEAD_DIM:(h + 1) * HEAD_DIM, :])
        return out

    def kernel(dec_ref, enc_ref, sa_wqkv_ref, sa_bqkv_ref, wsq_ref, ca_wkv_ref,
               ffn_w1_ref, ffn_w2_ref, vec128_ref, vec64_ref,
               out_ref, k_self_ref, v_self_ref, k_cross_ref, v_cross_ref):
        bt, s, e = dec_ref.shape
        t = enc_ref.shape[1]
        vec64 = vec64_ref[...]
        vec128 = vec128_ref[...]

        xf = dec_ref[...].reshape(bt * s, e)      # (bt*S, E) — fill MXU/sublane rows
        encf = enc_ref[...].reshape(bt * t, e)    # (bt*T, E)

        # ---- causal multi-head self-attention (fused QKV) ----
        qkv = mm(xf, sa_wqkv_ref[...]) + sa_bqkv_ref[...]
        q, k, v = qkv[:, 0:e], qkv[:, e:2 * e], qkv[:, 2 * e:3 * e]
        k_self_ref[...] = k.reshape(bt, s, e)     # lane-dense (bt, S, 64) cache stores
        v_self_ref[...] = v.reshape(bt, s, e)
        ctx = attention(split_heads(q * SCALE, bt, s), split_heads(k, bt, s),
                        split_heads(v, bt, s), causal=True)
        self_out = o_project(ctx, wsq_ref[W_SA_O], V64_SA_BO, vec64, bt, s)
        yf = xf + layernorm(self_out, vec64, V64_LN1_G)

        # ---- cross-attention against the encoder output (fused KV) ----
        q2 = mm(yf, wsq_ref[W_CA_Q]) + vec64[V64_CA_BQ:V64_CA_BQ + 1, :]
        kv2 = mm(encf, ca_wkv_ref[...]) + vec128[V128_CA_BKV:V128_CA_BKV + 1, :]
        k2, v2 = kv2[:, 0:e], kv2[:, e:2 * e]
        k_cross_ref[...] = k2.reshape(bt, t, e)
        v_cross_ref[...] = v2.reshape(bt, t, e)
        ctx2 = attention(split_heads(q2 * SCALE, bt, s), split_heads(k2, bt, t),
                         split_heads(v2, bt, t), causal=False)
        cross_out = o_project(ctx2, wsq_ref[W_CA_O], V64_CA_BO, vec64, bt, s)
        zf = yf + layernorm(cross_out, vec64, V64_LN2_G)

        # ---- feed-forward network ----
        # TODO(synk): nn.Dropout layers are stochastic; implemented as identity (eval-mode semantics).
        h1 = jnp.maximum(mm(zf, ffn_w1_ref[...]) + vec128[V128_FFN_B1:V128_FFN_B1 + 1, :], 0.0)
        ffn_out = mm(h1, ffn_w2_ref[...]) + vec64[V64_FFN_B2:V64_FFN_B2 + 1, :]
        out_ref[...] = (zf + layernorm(ffn_out, vec64, V64_LN3_G)).reshape(bt, s, e)

    return kernel


# ---------------- wrapper ----------------
def transformer_decoder_unit(dec, enc, params, batch_tile=None, matmul_dtype=jnp.float32):
    """dec: (B, S, E), enc: (B, T, E); params: packed tuple from init_params()."""
    B, S, E = dec.shape
    T = enc.shape[1]
    assert E == EMBED_DIM

    if batch_tile is None:
        # Fill the MXU M dimension (~256 rows); for large B this naturally leaves >=2 grid
        # steps (marked "parallel") so both v7x TensorCores get work.
        batch_tile = max(1, min(B, 256 // max(S, 1)))
        while B % batch_tile:
            batch_tile -= 1
    assert B % batch_tile == 0
    grid = (B // batch_tile,)

    def weight_spec(shape):
        n = len(shape)
        return pl.BlockSpec(shape, lambda b, n=n: (0,) * n)   # constant index map: fetched once

    in_specs = [
        pl.BlockSpec((batch_tile, S, E), lambda b: (b, 0, 0)),
        pl.BlockSpec((batch_tile, T, E), lambda b: (b, 0, 0)),
    ] + [weight_spec(p.shape) for p in params]

    out_shape = (
        jax.ShapeDtypeStruct((B, S, E), jnp.float32),   # norm_FFN_out
        jax.ShapeDtypeStruct((B, S, E), jnp.float32),   # k_self (lane-dense; head split in wrapper)
        jax.ShapeDtypeStruct((B, S, E), jnp.float32),   # v_self
        jax.ShapeDtypeStruct((B, T, E), jnp.float32),   # k_cross
        jax.ShapeDtypeStruct((B, T, E), jnp.float32),   # v_cross
    )
    out_specs = (
        pl.BlockSpec((batch_tile, S, E), lambda b: (b, 0, 0)),
        pl.BlockSpec((batch_tile, S, E), lambda b: (b, 0, 0)),
        pl.BlockSpec((batch_tile, S, E), lambda b: (b, 0, 0)),
        pl.BlockSpec((batch_tile, T, E), lambda b: (b, 0, 0)),
        pl.BlockSpec((batch_tile, T, E), lambda b: (b, 0, 0)),
    )

    out, k_self, v_self, k_cross, v_cross = pl.pallas_call(
        _build_kernel(matmul_dtype),
        out_shape=out_shape,
        grid_spec=pltpu.PrefetchScalarGridSpec(
            num_scalar_prefetch=0, grid=grid, in_specs=in_specs, out_specs=out_specs),
        compiler_params=pltpu.CompilerParams(dimension_semantics=("parallel",)),
    )(dec, enc, *params)

    def to_heads(t):   # (B, L, E) -> (B, H, L, hd), matching the PyTorch transpose(1, 2)
        b_, l_, _ = t.shape
        return t.reshape(b_, l_, NUM_HEADS, HEAD_DIM).transpose(0, 2, 1, 3)

    return out, to_heads(k_self), to_heads(v_self), to_heads(k_cross), to_heads(v_cross)


# ---------------- deterministic parameter init (pre-packed) ----------------
# TODO(synk): LoRALinear (use_lora=False default) treated as a plain Linear(embed_dim, embed_dim).
def init_params(key):
    def dense(k, fan_in, fan_out):
        k1, k2 = jax.random.split(k)
        bound = 1.0 / math.sqrt(fan_in)
        w = jax.random.uniform(k1, (fan_in, fan_out), jnp.float32, -bound, bound)
        b = jax.random.uniform(k2, (1, fan_out), jnp.float32, -bound, bound)
        return w, b

    keys = jax.random.split(key, 10)
    sa_wq, sa_bq = dense(keys[0], EMBED_DIM, EMBED_DIM)
    sa_wk, sa_bk = dense(keys[1], EMBED_DIM, EMBED_DIM)
    sa_wv, sa_bv = dense(keys[2], EMBED_DIM, EMBED_DIM)
    sa_wo, sa_bo = dense(keys[3], EMBED_DIM, EMBED_DIM)
    ca_wq, ca_bq = dense(keys[4], EMBED_DIM, EMBED_DIM)
    ca_wk, ca_bk = dense(keys[5], EMBED_DIM, EMBED_DIM)
    ca_wv, ca_bv = dense(keys[6], EMBED_DIM, EMBED_DIM)
    ca_wo, ca_bo = dense(keys[7], EMBED_DIM, EMBED_DIM)
    ffn_w1, ffn_b1 = dense(keys[8], EMBED_DIM, HIDDEN_DIM)
    ffn_w2, ffn_b2 = dense(keys[9], HIDDEN_DIM, EMBED_DIM)
    ones = jnp.ones((1, EMBED_DIM), jnp.float32)
    zeros = jnp.zeros((1, EMBED_DIM), jnp.float32)
    ln1_g, ln1_b, ln2_g, ln2_b, ln3_g, ln3_b = ones, zeros, ones, zeros, ones, zeros

    sa_wqkv = jnp.concatenate([sa_wq, sa_wk, sa_wv], axis=1)            # (E, 3E)
    sa_bqkv = jnp.concatenate([sa_bq, sa_bk, sa_bv], axis=1)            # (1, 3E)
    wsq = jnp.stack([sa_wo, ca_wq, ca_wo], axis=0)                      # (3, E, E)
    ca_wkv = jnp.concatenate([ca_wk, ca_wv], axis=1)                    # (E, 2E)
    vec128 = jnp.concatenate(
        [jnp.concatenate([ca_bk, ca_bv], axis=1), ffn_b1], axis=0)      # (2, 128)
    vec64 = jnp.concatenate(
        [sa_bo, ca_bq, ca_bo, ffn_b2,
         ln1_g, ln1_b, ln2_g, ln2_b, ln3_g, ln3_b], axis=0)             # (10, 64)
    return (sa_wqkv, sa_bqkv, wsq, ca_wkv, ffn_w1, ffn_w2, vec128, vec64)


if __name__ == "__main__":
    B, S, T = 2, 8, 8
    key = jax.random.PRNGKey(0)
    kd, ke, kp = jax.random.split(key, 3)
    decoder_in = jax.random.normal(kd, (B, S, EMBED_DIM), jnp.float32)
    encoder_out = jax.random.normal(ke, (B, T, EMBED_DIM), jnp.float32)
    params = init_params(kp)

    outs = transformer_decoder_unit(decoder_in, encoder_out, params)
    jax.block_until_ready(outs)
    print("KERNEL_OK")
</pallas_src>

<mosaic_0001>
module attributes {stable_mosaic.version = 11 : i64} {
  func.func @kernel(%arg0: i32, %arg1: memref<2x8x64xf32, #tpu.memory_space<vmem>>, %arg2: memref<2x8x64xf32, #tpu.memory_space<vmem>>, %arg3: memref<64x192xf32, #tpu.memory_space<vmem>>, %arg4: memref<1x192xf32, #tpu.memory_space<vmem>>, %arg5: memref<3x64x64xf32, #tpu.memory_space<vmem>>, %arg6: memref<64x128xf32, #tpu.memory_space<vmem>>, %arg7: memref<64x128xf32, #tpu.memory_space<vmem>>, %arg8: memref<128x64xf32, #tpu.memory_space<vmem>>, %arg9: memref<2x128xf32, #tpu.memory_space<vmem>>, %arg10: memref<10x64xf32, #tpu.memory_space<vmem>>, %arg11: memref<2x8x64xf32, #tpu.memory_space<vmem>>, %arg12: memref<2x8x64xf32, #tpu.memory_space<vmem>>, %arg13: memref<2x8x64xf32, #tpu.memory_space<vmem>>, %arg14: memref<2x8x64xf32, #tpu.memory_space<vmem>>, %arg15: memref<2x8x64xf32, #tpu.memory_space<vmem>>) attributes {dimension_semantics = [#tpu.dimension_semantics<parallel>], iteration_bounds = array<i64: 1>, scalar_prefetch = 0 : i64, scratch_operands = 0 : i64, tpu.core_type = #tpu.core_type<tc>, window_params = [{transform_indices = @transform_0, window_bounds = array<i64: 2, 8, 64>}, {transform_indices = @transform_1, window_bounds = array<i64: 2, 8, 64>}, {pipeline_mode = #tpu.pipeline_mode<synchronous>, transform_indices = @transform_2, window_bounds = array<i64: 64, 192>}, {pipeline_mode = #tpu.pipeline_mode<synchronous>, transform_indices = @transform_3, window_bounds = array<i64: 1, 192>}, {pipeline_mode = #tpu.pipeline_mode<synchronous>, transform_indices = @transform_4, window_bounds = array<i64: 3, 64, 64>}, {pipeline_mode = #tpu.pipeline_mode<synchronous>, transform_indices = @transform_5, window_bounds = array<i64: 64, 128>}, {pipeline_mode = #tpu.pipeline_mode<synchronous>, transform_indices = @transform_6, window_bounds = array<i64: 64, 128>}, {pipeline_mode = #tpu.pipeline_mode<synchronous>, transform_indices = @transform_7, window_bounds = array<i64: 128, 64>}, {pipeline_mode = #tpu.pipeline_mode<synchronous>, transform_indices = @transform_8, window_bounds = array<i64: 2, 128>}, {pipeline_mode = #tpu.pipeline_mode<synchronous>, transform_indices = @transform_9, window_bounds = array<i64: 10, 64>}, {transform_indices = @transform_10, window_bounds = array<i64: 2, 8, 64>}, {transform_indices = @transform_11, window_bounds = array<i64: 2, 8, 64>}, {transform_indices = @transform_12, window_bounds = array<i64: 2, 8, 64>}, {transform_indices = @transform_13, window_bounds = array<i64: 2, 8, 64>}, {transform_indices = @transform_14, window_bounds = array<i64: 2, 8, 64>}]} {
    %c0 = arith.constant 0 : index
    %c0_0 = arith.constant 0 : index
    %0 = vector.load %arg10[%c0, %c0_0] : memref<10x64xf32, #tpu.memory_space<vmem>>, vector<10x64xf32>
    %c0_1 = arith.constant 0 : index
    %c0_2 = arith.constant 0 : index
    %1 = vector.load %arg9[%c0_1, %c0_2] : memref<2x128xf32, #tpu.memory_space<vmem>>, vector<2x128xf32>
    %c0_3 = arith.constant 0 : index
    %c0_4 = arith.constant 0 : index
    %c0_5 = arith.constant 0 : index
    %2 = vector.load %arg1[%c0_3, %c0_4, %c0_5] : memref<2x8x64xf32, #tpu.memory_space<vmem>>, vector<2x8x64xf32>
    %3 = vector.shape_cast %2 : vector<2x8x64xf32> to vector<16x64xf32>
    %c0_6 = arith.constant 0 : index
    %c0_7 = arith.constant 0 : index
    %c0_8 = arith.constant 0 : index
    %4 = vector.load %arg2[%c0_6, %c0_7, %c0_8] : memref<2x8x64xf32, #tpu.memory_space<vmem>>, vector<2x8x64xf32>
    %5 = vector.shape_cast %4 : vector<2x8x64xf32> to vector<16x64xf32>
    %c0_9 = arith.constant 0 : index
    %c0_10 = arith.constant 0 : index
    %6 = vector.load %arg3[%c0_9, %c0_10] : memref<64x192xf32, #tpu.memory_space<vmem>>, vector<64x192xf32>
    %cst = arith.constant dense<0.000000e+00> : vector<16x192xf32>
    %7 = tpu.matmul %3, %6, %cst {dimension_numbers = #tpu.dot_dimension_numbers<[1], [0], [0], [1], [0, 0, 1, 1], [], []>} : vector<16x64xf32>, vector<64x192xf32>, vector<16x192xf32> -> vector<16x192xf32>
    %c0_11 = arith.constant 0 : index
    %c0_12 = arith.constant 0 : index
    %8 = vector.load %arg4[%c0_11, %c0_12] : memref<1x192xf32, #tpu.memory_space<vmem>>, vector<1x192xf32>
    %9 = vector.broadcast %8 : vector<1x192xf32> to vector<16x192xf32>
    %10 = arith.addf %7, %9 : vector<16x192xf32>
    %11 = vector.extract_strided_slice %10 {offsets = [0, 0], sizes = [16, 64], strides = [1, 1]} : vector<16x192xf32> to vector<16x64xf32>
    %12 = vector.extract_strided_slice %10 {offsets = [0, 64], sizes = [16, 64], strides = [1, 1]} : vector<16x192xf32> to vector<16x64xf32>
    %13 = vector.extract_strided_slice %10 {offsets = [0, 128], sizes = [16, 64], strides = [1, 1]} : vector<16x192xf32> to vector<16x64xf32>
    %14 = vector.shape_cast %12 : vector<16x64xf32> to vector<2x8x64xf32>
    %c0_13 = arith.constant 0 : index
    %c0_14 = arith.constant 0 : index
    %c0_15 = arith.constant 0 : index
    %15 = vector.load %arg12[%c0_13, %c0_14, %c0_15] : memref<2x8x64xf32, #tpu.memory_space<vmem>>, vector<2x8x64xf32>
    tpu.vector_store %arg12[%c0_13, %c0_14, %c0_15], %14 {strides = array<i32>} : memref<2x8x64xf32, #tpu.memory_space<vmem>>, vector<2x8x64xf32>,
    %16 = vector.shape_cast %13 : vector<16x64xf32> to vector<2x8x64xf32>
    %c0_16 = arith.constant 0 : index
    %c0_17 = arith.constant 0 : index
    %c0_18 = arith.constant 0 : index
    %17 = vector.load %arg13[%c0_16, %c0_17, %c0_18] : memref<2x8x64xf32, #tpu.memory_space<vmem>>, vector<2x8x64xf32>
    tpu.vector_store %arg13[%c0_16, %c0_17, %c0_18], %16 {strides = array<i32>} : memref<2x8x64xf32, #tpu.memory_space<vmem>>, vector<2x8x64xf32>,
    %cst_19 = arith.constant 0.176776692 : f32
    %18 = vector.broadcast %cst_19 : f32 to vector<16x64xf32>
    %19 = arith.mulf %11, %18 : vector<16x64xf32>
    %20 = vector.shape_cast %19 : vector<16x64xf32> to vector<2x8x64xf32>
    %21 = vector.extract_strided_slice %20 {offsets = [0, 0, 0], sizes = [2, 8, 32], strides = [1, 1, 1]} : vector<2x8x64xf32> to vector<2x8x32xf32>
    %22 = vector.extract_strided_slice %20 {offsets = [0, 0, 32], sizes = [2, 8, 32], strides = [1, 1, 1]} : vector<2x8x64xf32> to vector<2x8x32xf32>
    %23 = tpu.concatenate %21, %22 in 0 : vector<2x8x32xf32>, vector<2x8x32xf32> -> vector<4x8x32xf32>
    %24 = vector.shape_cast %12 : vector<16x64xf32> to vector<2x8x64xf32>
    %25 = vector.extract_strided_slice %24 {offsets = [0, 0, 0], sizes = [2, 8, 32], strides = [1, 1, 1]} : vector<2x8x64xf32> to vector<2x8x32xf32>
    %26 = vector.extract_strided_slice %24 {offsets = [0, 0, 32], sizes = [2, 8, 32], strides = [1, 1, 1]} : vector<2x8x64xf32> to vector<2x8x32xf32>
    %27 = tpu.concatenate %25, %26 in 0 : vector<2x8x32xf32>, vector<2x8x32xf32> -> vector<4x8x32xf32>
    %28 = vector.shape_cast %13 : vector<16x64xf32> to vector<2x8x64xf32>
    %29 = vector.extract_strided_slice %28 {offsets = [0, 0, 0], sizes = [2, 8, 32], strides = [1, 1, 1]} : vector<2x8x64xf32> to vector<2x8x32xf32>
    %30 = vector.extract_strided_slice %28 {offsets = [0, 0, 32], sizes = [2, 8, 32], strides = [1, 1, 1]} : vector<2x8x64xf32> to vector<2x8x32xf32>
    %31 = tpu.concatenate %29, %30 in 0 : vector<2x8x32xf32>, vector<2x8x32xf32> -> vector<4x8x32xf32>
    "tpu.trace_start"() <{level = 10 : i32, message = "nqd,nkd->nqk"}> : () -> ()
    %cst_20 = arith.constant dense<0.000000e+00> : vector<4x8x8xf32>
    %32 = tpu.matmul %23, %27, %cst_20 {dimension_numbers = #tpu.dot_dimension_numbers<[2], [2], [1], [1], [0, 0, 0, 1, 1, 1], [0], [0]>} : vector<4x8x32xf32>, vector<4x8x32xf32>, vector<4x8x8xf32> -> vector<4x8x8xf32>
    "tpu.trace_stop"() : () -> ()
    %33 = tpu.iota {dimensions = array<i32: 0>} : vector<8x8xi32>
    %34 = tpu.iota {dimensions = array<i32: 1>} : vector<8x8xi32>
    %35 = arith.cmpi sle, %34, %33 : vector<8x8xi32>
    %36 = vector.shape_cast %35 : vector<8x8xi1> to vector<1x8x8xi1>
    %cst_21 = arith.constant -1.000000e+30 : f32
    %37 = vector.shape_cast %36 : vector<1x8x8xi1> to vector<1x8x8xi1>
    %38 = vector.broadcast %37 : vector<1x8x8xi1> to vector<4x8x8xi1>
    %39 = vector.broadcast %cst_21 : f32 to vector<4x8x8xf32>
    %40 = arith.select %38, %32, %39 : vector<4x8x8xi1>, vector<4x8x8xf32>
    %cst_22 = arith.constant dense<0xFF800000> : vector<4x8xf32>
    %41 = vector.multi_reduction <maximumf>, %40, %cst_22 [2] : vector<4x8x8xf32> to vector<4x8xf32>
    %42 = vector.shape_cast %41 : vector<4x8xf32> to vector<4x8x1xf32>
    %43 = vector.broadcast %42 : vector<4x8x1xf32> to vector<4x8x8xf32>
    %44 = arith.subf %40, %43 : vector<4x8x8xf32>
    %45 = math.exp %44 : vector<4x8x8xf32>
    %cst_23 = arith.constant dense<0.000000e+00> : vector<4x8xf32>
    %46 = vector.multi_reduction <add>, %45, %cst_23 [2] : vector<4x8x8xf32> to vector<4x8xf32>
    %47 = vector.shape_cast %46 : vector<4x8xf32> to vector<4x8x1xf32>
    %48 = tpu.reciprocal %47 {approx = true} : vector<4x8x1xf32> -> vector<4x8x1xf32>
    %49 = vector.broadcast %48 : vector<4x8x1xf32> to vector<4x8x8xf32>
    %50 = arith.mulf %45, %49 : vector<4x8x8xf32>
    "tpu.trace_start"() <{level = 10 : i32, message = "nqk,nkd->nqd"}> : () -> ()
    %cst_24 = arith.constant dense<0.000000e+00> : vector<4x8x32xf32>
    %51 = tpu.matmul %50, %31, %cst_24 {dimension_numbers = #tpu.dot_dimension_numbers<[2], [1], [1], [2], [0, 0, 0, 1, 1, 2], [0], [0]>} : vector<4x8x8xf32>, vector<4x8x32xf32>, vector<4x8x32xf32> -> vector<4x8x32xf32>
    "tpu.trace_stop"() : () -> ()
    %c0_25 = arith.constant 0 : index
    %c0_26 = arith.constant 0 : index
    %c0_27 = arith.constant 0 : index
    %52 = vector.load %arg5[%c0_25, %c0_26, %c0_27] : memref<3x64x64xf32, #tpu.memory_space<vmem>>, vector<1x64x64xf32>
    %53 = vector.shape_cast %52 : vector<1x64x64xf32> to vector<64x64xf32>
    %54 = vector.extract_strided_slice %0 {offsets = [0, 0], sizes = [1, 64], strides = [1, 1]} : vector<10x64xf32> to vector<1x64xf32>
    %55 = vector.extract_strided_slice %51 {offsets = [0, 0, 0], sizes = [2, 8, 32], strides = [1, 1, 1]} : vector<4x8x32xf32> to vector<2x8x32xf32>
    %56 = vector.shape_cast %55 : vector<2x8x32xf32> to vector<16x32xf32>
    %57 = vector.extract_strided_slice %53 {offsets = [0, 0], sizes = [32, 64], strides = [1, 1]} : vector<64x64xf32> to vector<32x64xf32>
    %cst_28 = arith.constant dense<0.000000e+00> : vector<16x64xf32>
    %58 = tpu.matmul %56, %57, %cst_28 {dimension_numbers = #tpu.dot_dimension_numbers<[1], [0], [0], [1], [0, 0, 1, 1], [], []>} : vector<16x32xf32>, vector<32x64xf32>, vector<16x64xf32> -> vector<16x64xf32>
    %59 = vector.broadcast %54 : vector<1x64xf32> to vector<16x64xf32>
    %60 = arith.addf %59, %58 : vector<16x64xf32>
    %61 = vector.extract_strided_slice %51 {offsets = [2, 0, 0], sizes = [2, 8, 32], strides = [1, 1, 1]} : vector<4x8x32xf32> to vector<2x8x32xf32>
    %62 = vector.shape_cast %61 : vector<2x8x32xf32> to vector<16x32xf32>
    %63 = vector.extract_strided_slice %53 {offsets = [32, 0], sizes = [32, 64], strides = [1, 1]} : vector<64x64xf32> to vector<32x64xf32>
    %cst_29 = arith.constant dense<0.000000e+00> : vector<16x64xf32>
    %64 = tpu.matmul %62, %63, %cst_29 {dimension_numbers = #tpu.dot_dimension_numbers<[1], [0], [0], [1], [0, 0, 1, 1], [], []>} : vector<16x32xf32>, vector<32x64xf32>, vector<16x64xf32> -> vector<16x64xf32>
    %65 = arith.addf %60, %64 : vector<16x64xf32>
    %66 = vector.extract_strided_slice %0 {offsets = [4, 0], sizes = [1, 64], strides = [1, 1]} : vector<10x64xf32> to vector<1x64xf32>
    %67 = vector.extract_strided_slice %0 {offsets = [5, 0], sizes = [1, 64], strides = [1, 1]} : vector<10x64xf32> to vector<1x64xf32>
    %cst_30 = arith.constant dense<0.000000e+00> : vector<16xf32>
    %68 = vector.multi_reduction <add>, %65, %cst_30 [1] : vector<16x64xf32> to vector<16xf32>
    %69 = vector.shape_cast %68 : vector<16xf32> to vector<16x1xf32>
    %cst_31 = arith.constant 6.400000e+01 : f32
    %70 = vector.broadcast %cst_31 : f32 to vector<16x1xf32>
    %71 = arith.divf %69, %70 : vector<16x1xf32>
    %72 = vector.broadcast %71 : vector<16x1xf32> to vector<16x64xf32>
    %73 = arith.subf %65, %72 : vector<16x64xf32>
    %74 = arith.mulf %73, %73 : vector<16x64xf32>
    %cst_32 = arith.constant dense<0.000000e+00> : vector<16xf32>
    %75 = vector.multi_reduction <add>, %74, %cst_32 [1] : vector<16x64xf32> to vector<16xf32>
    %76 = vector.shape_cast %75 : vector<16xf32> to vector<16x1xf32>
    %cst_33 = arith.constant 6.400000e+01 : f32
    %77 = vector.broadcast %cst_33 : f32 to vector<16x1xf32>
    %78 = arith.divf %76, %77 : vector<16x1xf32>
    %cst_34 = arith.constant 9.99999974E-6 : f32
    %79 = vector.broadcast %cst_34 : f32 to vector<16x1xf32>
    %80 = arith.addf %78, %79 : vector<16x1xf32>
    %81 = math.rsqrt %80 : vector<16x1xf32>
    %82 = vector.broadcast %81 : vector<16x1xf32> to vector<16x64xf32>
    %83 = arith.mulf %73, %82 : vector<16x64xf32>
    %84 = vector.broadcast %66 : vector<1x64xf32> to vector<16x64xf32>
    %85 = arith.mulf %83, %84 : vector<16x64xf32>
    %86 = vector.broadcast %67 : vector<1x64xf32> to vector<16x64xf32>
    %87 = arith.addf %85, %86 : vector<16x64xf32>
    %88 = arith.addf %3, %87 : vector<16x64xf32>
    %c1 = arith.constant 1 : index
    %c0_35 = arith.constant 0 : index
    %c0_36 = arith.constant 0 : index
    %89 = vector.load %arg5[%c1, %c0_35, %c0_36] : memref<3x64x64xf32, #tpu.memory_space<vmem>>, vector<1x64x64xf32>
    %90 = vector.shape_cast %89 : vector<1x64x64xf32> to vector<64x64xf32>
    %cst_37 = arith.constant dense<0.000000e+00> : vector<16x64xf32>
    %91 = tpu.matmul %88, %90, %cst_37 {dimension_numbers = #tpu.dot_dimension_numbers<[1], [0], [0], [1], [0, 0, 1, 1], [], []>} : vector<16x64xf32>, vector<64x64xf32>, vector<16x64xf32> -> vector<16x64xf32>
    %92 = vector.extract_strided_slice %0 {offsets = [1, 0], sizes = [1, 64], strides = [1, 1]} : vector<10x64xf32> to vector<1x64xf32>
    %93 = vector.broadcast %92 : vector<1x64xf32> to vector<16x64xf32>
    %94 = arith.addf %91, %93 : vector<16x64xf32>
    %c0_38 = arith.constant 0 : index
    %c0_39 = arith.constant 0 : index
    %95 = vector.load %arg6[%c0_38, %c0_39] : memref<64x128xf32, #tpu.memory_space<vmem>>, vector<64x128xf32>
    %cst_40 = arith.constant dense<0.000000e+00> : vector<16x128xf32>
    %96 = tpu.matmul %5, %95, %cst_40 {dimension_numbers = #tpu.dot_dimension_numbers<[1], [0], [0], [1], [0, 0, 1, 1], [], []>} : vector<16x64xf32>, vector<64x128xf32>, vector<16x128xf32> -> vector<16x128xf32>
    %97 = vector.extract_strided_slice %1 {offsets = [0, 0], sizes = [1, 128], strides = [1, 1]} : vector<2x128xf32> to vector<1x128xf32>
    %98 = vector.broadcast %97 : vector<1x128xf32> to vector<16x128xf32>
    %99 = arith.addf %96, %98 : vector<16x128xf32>
    %100 = vector.extract_strided_slice %99 {offsets = [0, 0], sizes = [16, 64], strides = [1, 1]} : vector<16x128xf32> to vector<16x64xf32>
    %101 = vector.extract_strided_slice %99 {offsets = [0, 64], sizes = [16, 64], strides = [1, 1]} : vector<16x128xf32> to vector<16x64xf32>
    %102 = vector.shape_cast %100 : vector<16x64xf32> to vector<2x8x64xf32>
    %c0_41 = arith.constant 0 : index
    %c0_42 = arith.constant 0 : index
    %c0_43 = arith.constant 0 : index
    %103 = vector.load %arg14[%c0_41, %c0_42, %c0_43] : memref<2x8x64xf32, #tpu.memory_space<vmem>>, vector<2x8x64xf32>
    tpu.vector_store %arg14[%c0_41, %c0_42, %c0_43], %102 {strides = array<i32>} : memref<2x8x64xf32, #tpu.memory_space<vmem>>, vector<2x8x64xf32>,
    %104 = vector.shape_cast %101 : vector<16x64xf32> to vector<2x8x64xf32>
    %c0_44 = arith.constant 0 : index
    %c0_45 = arith.constant 0 : index
    %c0_46 = arith.constant 0 : index
    %105 = vector.load %arg15[%c0_44, %c0_45, %c0_46] : memref<2x8x64xf32, #tpu.memory_space<vmem>>, vector<2x8x64xf32>
    tpu.vector_store %arg15[%c0_44, %c0_45, %c0_46], %104 {strides = array<i32>} : memref<2x8x64xf32, #tpu.memory_space<vmem>>, vector<2x8x64xf32>,
    %cst_47 = arith.constant 0.176776692 : f32
    %106 = vector.broadcast %cst_47 : f32 to vector<16x64xf32>
    %107 = arith.mulf %94, %106 : vector<16x64xf32>
    %108 = vector.shape_cast %107 : vector<16x64xf32> to vector<2x8x64xf32>
    %109 = vector.extract_strided_slice %108 {offsets = [0, 0, 0], sizes = [2, 8, 32], strides = [1, 1, 1]} : vector<2x8x64xf32> to vector<2x8x32xf32>
    %110 = vector.extract_strided_slice %108 {offsets = [0, 0, 32], sizes = [2, 8, 32], strides = [1, 1, 1]} : vector<2x8x64xf32> to vector<2x8x32xf32>
    %111 = tpu.concatenate %109, %110 in 0 : vector<2x8x32xf32>, vector<2x8x32xf32> -> vector<4x8x32xf32>
    %112 = vector.shape_cast %100 : vector<16x64xf32> to vector<2x8x64xf32>
    %113 = vector.extract_strided_slice %112 {offsets = [0, 0, 0], sizes = [2, 8, 32], strides = [1, 1, 1]} : vector<2x8x64xf32> to vector<2x8x32xf32>
    %114 = vector.extract_strided_slice %112 {offsets = [0, 0, 32], sizes = [2, 8, 32], strides = [1, 1, 1]} : vector<2x8x64xf32> to vector<2x8x32xf32>
    %115 = tpu.concatenate %113, %114 in 0 : vector<2x8x32xf32>, vector<2x8x32xf32> -> vector<4x8x32xf32>
    %116 = vector.shape_cast %101 : vector<16x64xf32> to vector<2x8x64xf32>
    %117 = vector.extract_strided_slice %116 {offsets = [0, 0, 0], sizes = [2, 8, 32], strides = [1, 1, 1]} : vector<2x8x64xf32> to vector<2x8x32xf32>
    %118 = vector.extract_strided_slice %116 {offsets = [0, 0, 32], sizes = [2, 8, 32], strides = [1, 1, 1]} : vector<2x8x64xf32> to vector<2x8x32xf32>
    %119 = tpu.concatenate %117, %118 in 0 : vector<2x8x32xf32>, vector<2x8x32xf32> -> vector<4x8x32xf32>
    "tpu.trace_start"() <{level = 10 : i32, message = "nqd,nkd->nqk"}> : () -> ()
    %cst_48 = arith.constant dense<0.000000e+00> : vector<4x8x8xf32>
    %120 = tpu.matmul %111, %115, %cst_48 {dimension_numbers = #tpu.dot_dimension_numbers<[2], [2], [1], [1], [0, 0, 0, 1, 1, 1], [0], [0]>} : vector<4x8x32xf32>, vector<4x8x32xf32>, vector<4x8x8xf32> -> vector<4x8x8xf32>
    "tpu.trace_stop"() : () -> ()
    %cst_49 = arith.constant dense<0xFF800000> : vector<4x8xf32>
    %121 = vector.multi_reduction <maximumf>, %120, %cst_49 [2] : vector<4x8x8xf32> to vector<4x8xf32>
    %122 = vector.shape_cast %121 : vector<4x8xf32> to vector<4x8x1xf32>
    %123 = vector.broadcast %122 : vector<4x8x1xf32> to vector<4x8x8xf32>
    %124 = arith.subf %120, %123 : vector<4x8x8xf32>
    %125 = math.exp %124 : vector<4x8x8xf32>
    %cst_50 = arith.constant dense<0.000000e+00> : vector<4x8xf32>
    %126 = vector.multi_reduction <add>, %125, %cst_50 [2] : vector<4x8x8xf32> to vector<4x8xf32>
    %127 = vector.shape_cast %126 : vector<4x8xf32> to vector<4x8x1xf32>
    %128 = tpu.reciprocal %127 {approx = true} : vector<4x8x1xf32> -> vector<4x8x1xf32>
    %129 = vector.broadcast %128 : vector<4x8x1xf32> to vector<4x8x8xf32>
    %130 = arith.mulf %125, %129 : vector<4x8x8xf32>
    "tpu.trace_start"() <{level = 10 : i32, message = "nqk,nkd->nqd"}> : () -> ()
    %cst_51 = arith.constant dense<0.000000e+00> : vector<4x8x32xf32>
    %131 = tpu.matmul %130, %119, %cst_51 {dimension_numbers = #tpu.dot_dimension_numbers<[2], [1], [1], [2], [0, 0, 0, 1, 1, 2], [0], [0]>} : vector<4x8x8xf32>, vector<4x8x32xf32>, vector<4x8x32xf32> -> vector<4x8x32xf32>
    "tpu.trace_stop"() : () -> ()
    %c2 = arith.constant 2 : index
    %c0_52 = arith.constant 0 : index
    %c0_53 = arith.constant 0 : index
    %132 = vector.load %arg5[%c2, %c0_52, %c0_53] : memref<3x64x64xf32, #tpu.memory_space<vmem>>, vector<1x64x64xf32>
    %133 = vector.shape_cast %132 : vector<1x64x64xf32> to vector<64x64xf32>
    %134 = vector.extract_strided_slice %0 {offsets = [2, 0], sizes = [1, 64], strides = [1, 1]} : vector<10x64xf32> to vector<1x64xf32>
    %135 = vector.extract_strided_slice %131 {offsets = [0, 0, 0], sizes = [2, 8, 32], strides = [1, 1, 1]} : vector<4x8x32xf32> to vector<2x8x32xf32>
    %136 = vector.shape_cast %135 : vector<2x8x32xf32> to vector<16x32xf32>
    %137 = vector.extract_strided_slice %133 {offsets = [0, 0], sizes = [32, 64], strides = [1, 1]} : vector<64x64xf32> to vector<32x64xf32>
    %cst_54 = arith.constant dense<0.000000e+00> : vector<16x64xf32>
    %138 = tpu.matmul %136, %137, %cst_54 {dimension_numbers = #tpu.dot_dimension_numbers<[1], [0], [0], [1], [0, 0, 1, 1], [], []>} : vector<16x32xf32>, vector<32x64xf32>, vector<16x64xf32> -> vector<16x64xf32>
    %139 = vector.broadcast %134 : vector<1x64xf32> to vector<16x64xf32>
    %140 = arith.addf %139, %138 : vector<16x64xf32>
    %141 = vector.extract_strided_slice %131 {offsets = [2, 0, 0], sizes = [2, 8, 32], strides = [1, 1, 1]} : vector<4x8x32xf32> to vector<2x8x32xf32>
    %142 = vector.shape_cast %141 : vector<2x8x32xf32> to vector<16x32xf32>
    %143 = vector.extract_strided_slice %133 {offsets = [32, 0], sizes = [32, 64], strides = [1, 1]} : vector<64x64xf32> to vector<32x64xf32>
    %cst_55 = arith.constant dense<0.000000e+00> : vector<16x64xf32>
    %144 = tpu.matmul %142, %143, %cst_55 {dimension_numbers = #tpu.dot_dimension_numbers<[1], [0], [0], [1], [0, 0, 1, 1], [], []>} : vector<16x32xf32>, vector<32x64xf32>, vector<16x64xf32> -> vector<16x64xf32>
    %145 = arith.addf %140, %144 : vector<16x64xf32>
    %146 = vector.extract_strided_slice %0 {offsets = [6, 0], sizes = [1, 64], strides = [1, 1]} : vector<10x64xf32> to vector<1x64xf32>
    %147 = vector.extract_strided_slice %0 {offsets = [7, 0], sizes = [1, 64], strides = [1, 1]} : vector<10x64xf32> to vector<1x64xf32>
    %cst_56 = arith.constant dense<0.000000e+00> : vector<16xf32>
    %148 = vector.multi_reduction <add>, %145, %cst_56 [1] : vector<16x64xf32> to vector<16xf32>
    %149 = vector.shape_cast %148 : vector<16xf32> to vector<16x1xf32>
    %cst_57 = arith.constant 6.400000e+01 : f32
    %150 = vector.broadcast %cst_57 : f32 to vector<16x1xf32>
    %151 = arith.divf %149, %150 : vector<16x1xf32>
    %152 = vector.broadcast %151 : vector<16x1xf32> to vector<16x64xf32>
    %153 = arith.subf %145, %152 : vector<16x64xf32>
    %154 = arith.mulf %153, %153 : vector<16x64xf32>
    %cst_58 = arith.constant dense<0.000000e+00> : vector<16xf32>
    %155 = vector.multi_reduction <add>, %154, %cst_58 [1] : vector<16x64xf32> to vector<16xf32>
    %156 = vector.shape_cast %155 : vector<16xf32> to vector<16x1xf32>
    %cst_59 = arith.constant 6.400000e+01 : f32
    %157 = vector.broadcast %cst_59 : f32 to vector<16x1xf32>
    %158 = arith.divf %156, %157 : vector<16x1xf32>
    %cst_60 = arith.constant 9.99999974E-6 : f32
    %159 = vector.broadcast %cst_60 : f32 to vector<16x1xf32>
    %160 = arith.addf %158, %159 : vector<16x1xf32>
    %161 = math.rsqrt %160 : vector<16x1xf32>
    %162 = vector.broadcast %161 : vector<16x1xf32> to vector<16x64xf32>
    %163 = arith.mulf %153, %162 : vector<16x64xf32>
    %164 = vector.broadcast %146 : vector<1x64xf32> to vector<16x64xf32>
    %165 = arith.mulf %163, %164 : vector<16x64xf32>
    %166 = vector.broadcast %147 : vector<1x64xf32> to vector<16x64xf32>
    %167 = arith.addf %165, %166 : vector<16x64xf32>
    %168 = arith.addf %88, %167 : vector<16x64xf32>
    %c0_61 = arith.constant 0 : index
    %c0_62 = arith.constant 0 : index
    %169 = vector.load %arg7[%c0_61, %c0_62] : memref<64x128xf32, #tpu.memory_space<vmem>>, vector<64x128xf32>
    %cst_63 = arith.constant dense<0.000000e+00> : vector<16x128xf32>
    %170 = tpu.matmul %168, %169, %cst_63 {dimension_numbers = #tpu.dot_dimension_numbers<[1], [0], [0], [1], [0, 0, 1, 1], [], []>} : vector<16x64xf32>, vector<64x128xf32>, vector<16x128xf32> -> vector<16x128xf32>
    %171 = vector.extract_strided_slice %1 {offsets = [1, 0], sizes = [1, 128], strides = [1, 1]} : vector<2x128xf32> to vector<1x128xf32>
    %172 = vector.broadcast %171 : vector<1x128xf32> to vector<16x128xf32>
    %173 = arith.addf %170, %172 : vector<16x128xf32>
    %cst_64 = arith.constant 0.000000e+00 : f32
    %174 = vector.broadcast %cst_64 : f32 to vector<16x128xf32>
    %175 = arith.maximumf %173, %174 : vector<16x128xf32>
    %c0_65 = arith.constant 0 : index
    %c0_66 = arith.constant 0 : index
    %176 = vector.load %arg8[%c0_65, %c0_66] : memref<128x64xf32, #tpu.memory_space<vmem>>, vector<128x64xf32>
    %cst_67 = arith.constant dense<0.000000e+00> : vector<16x64xf32>
    %177 = tpu.matmul %175, %176, %cst_67 {dimension_numbers = #tpu.dot_dimension_numbers<[1], [0], [0], [1], [0, 0, 1, 1], [], []>} : vector<16x128xf32>, vector<128x64xf32>, vector<16x64xf32> -> vector<16x64xf32>
    %178 = vector.extract_strided_slice %0 {offsets = [3, 0], sizes = [1, 64], strides = [1, 1]} : vector<10x64xf32> to vector<1x64xf32>
    %179 = vector.broadcast %178 : vector<1x64xf32> to vector<16x64xf32>
    %180 = arith.addf %177, %179 : vector<16x64xf32>
    %181 = vector.extract_strided_slice %0 {offsets = [8, 0], sizes = [1, 64], strides = [1, 1]} : vector<10x64xf32> to vector<1x64xf32>
    %182 = vector.extract_strided_slice %0 {offsets = [9, 0], sizes = [1, 64], strides = [1, 1]} : vector<10x64xf32> to vector<1x64xf32>
    %cst_68 = arith.constant dense<0.000000e+00> : vector<16xf32>
    %183 = vector.multi_reduction <add>, %180, %cst_68 [1] : vector<16x64xf32> to vector<16xf32>
    %184 = vector.shape_cast %183 : vector<16xf32> to vector<16x1xf32>
    %cst_69 = arith.constant 6.400000e+01 : f32
    %185 = vector.broadcast %cst_69 : f32 to vector<16x1xf32>
    %186 = arith.divf %184, %185 : vector<16x1xf32>
    %187 = vector.broadcast %186 : vector<16x1xf32> to vector<16x64xf32>
    %188 = arith.subf %180, %187 : vector<16x64xf32>
    %189 = arith.mulf %188, %188 : vector<16x64xf32>
    %cst_70 = arith.constant dense<0.000000e+00> : vector<16xf32>
    %190 = vector.multi_reduction <add>, %189, %cst_70 [1] : vector<16x64xf32> to vector<16xf32>
    %191 = vector.shape_cast %190 : vector<16xf32> to vector<16x1xf32>
    %cst_71 = arith.constant 6.400000e+01 : f32
    %192 = vector.broadcast %cst_71 : f32 to vector<16x1xf32>
    %193 = arith.divf %191, %192 : vector<16x1xf32>
    %cst_72 = arith.constant 9.99999974E-6 : f32
    %194 = vector.broadcast %cst_72 : f32 to vector<16x1xf32>
    %195 = arith.addf %193, %194 : vector<16x1xf32>
    %196 = math.rsqrt %195 : vector<16x1xf32>
    %197 = vector.broadcast %196 : vector<16x1xf32> to vector<16x64xf32>
    %198 = arith.mulf %188, %197 : vector<16x64xf32>
    %199 = vector.broadcast %181 : vector<1x64xf32> to vector<16x64xf32>
    %200 = arith.mulf %198, %199 : vector<16x64xf32>
    %201 = vector.broadcast %182 : vector<1x64xf32> to vector<16x64xf32>
    %202 = arith.addf %200, %201 : vector<16x64xf32>
    %203 = arith.addf %168, %202 : vector<16x64xf32>
    %204 = vector.shape_cast %203 : vector<16x64xf32> to vector<2x8x64xf32>
    %c0_73 = arith.constant 0 : index
    %c0_74 = arith.constant 0 : index
    %c0_75 = arith.constant 0 : index
    %205 = vector.load %arg11[%c0_73, %c0_74, %c0_75] : memref<2x8x64xf32, #tpu.memory_space<vmem>>, vector<2x8x64xf32>
    tpu.vector_store %arg11[%c0_73, %c0_74, %c0_75], %204 {strides = array<i32>} : memref<2x8x64xf32, #tpu.memory_space<vmem>>, vector<2x8x64xf32>,
    return
  }
  func.func @transform_0(%arg0: i32) -> (i32, i32, i32) {
    %c0_i32 = arith.constant 0 : i32
    %c0_i32_0 = arith.constant 0 : i32
    %c0_i32_1 = arith.constant 0 : i32
    return %arg0, %c0_i32, %c0_i32_0 : i32, i32, i32
  }
  func.func @transform_1(%arg0: i32) -> (i32, i32, i32) {
    %c0_i32 = arith.constant 0 : i32
    %c0_i32_0 = arith.constant 0 : i32
    %c0_i32_1 = arith.constant 0 : i32
    return %arg0, %c0_i32, %c0_i32_0 : i32, i32, i32
  }
  func.func @transform_2(%arg0: i32) -> (i32, i32) {
    %c0_i32 = arith.constant 0 : i32
    %c0_i32_0 = arith.constant 0 : i32
    %c0_i32_1 = arith.constant 0 : i32
    return %c0_i32, %c0_i32_0 : i32, i32
  }
  func.func @transform_3(%arg0: i32) -> (i32, i32) {
    %c0_i32 = arith.constant 0 : i32
    %c0_i32_0 = arith.constant 0 : i32
    %c0_i32_1 = arith.constant 0 : i32
    return %c0_i32, %c0_i32_0 : i32, i32
  }
  func.func @transform_4(%arg0: i32) -> (i32, i32, i32) {
    %c0_i32 = arith.constant 0 : i32
    %c0_i32_0 = arith.constant 0 : i32
    %c0_i32_1 = arith.constant 0 : i32
    %c0_i32_2 = arith.constant 0 : i32
    return %c0_i32, %c0_i32_0, %c0_i32_1 : i32, i32, i32
  }
  func.func @transform_5(%arg0: i32) -> (i32, i32) {
    %c0_i32 = arith.constant 0 : i32
    %c0_i32_0 = arith.constant 0 : i32
    %c0_i32_1 = arith.constant 0 : i32
    return %c0_i32, %c0_i32_0 : i32, i32
  }
  func.func @transform_6(%arg0: i32) -> (i32, i32) {
    %c0_i32 = arith.constant 0 : i32
    %c0_i32_0 = arith.constant 0 : i32
    %c0_i32_1 = arith.constant 0 : i32
    return %c0_i32, %c0_i32_0 : i32, i32
  }
  func.func @transform_7(%arg0: i32) -> (i32, i32) {
    %c0_i32 = arith.constant 0 : i32
    %c0_i32_0 = arith.constant 0 : i32
    %c0_i32_1 = arith.constant 0 : i32
    return %c0_i32, %c0_i32_0 : i32, i32
  }
  func.func @transform_8(%arg0: i32) -> (i32, i32) {
    %c0_i32 = arith.constant 0 : i32
    %c0_i32_0 = arith.constant 0 : i32
    %c0_i32_1 = arith.constant 0 : i32
    return %c0_i32, %c0_i32_0 : i32, i32
  }
  func.func @transform_9(%arg0: i32) -> (i32, i32) {
    %c0_i32 = arith.constant 0 : i32
    %c0_i32_0 = arith.constant 0 : i32
    %c0_i32_1 = arith.constant 0 : i32
    return %c0_i32, %c0_i32_0 : i32, i32
  }
  func.func @transform_10(%arg0: i32) -> (i32, i32, i32) {
    %c0_i32 = arith.constant 0 : i32
    %c0_i32_0 = arith.constant 0 : i32
    %c0_i32_1 = arith.constant 0 : i32
    return %arg0, %c0_i32, %c0_i32_0 : i32, i32, i32
  }
  func.func @transform_11(%arg0: i32) -> (i32, i32, i32) {
    %c0_i32 = arith.constant 0 : i32
    %c0_i32_0 = arith.constant 0 : i32
    %c0_i32_1 = arith.constant 0 : i32
    return %arg0, %c0_i32, %c0_i32_0 : i32, i32, i32
  }
  func.func @transform_12(%arg0: i32) -> (i32, i32, i32) {
    %c0_i32 = arith.constant 0 : i32
    %c0_i32_0 = arith.constant 0 : i32
    %c0_i32_1 = arith.constant 0 : i32
    return %arg0, %c0_i32, %c0_i32_0 : i32, i32, i32
  }
  func.func @transform_13(%arg0: i32) -> (i32, i32, i32) {
    %c0_i32 = arith.constant 0 : i32
    %c0_i32_0 = arith.constant 0 : i32
    %c0_i32_1 = arith.constant 0 : i32
    return %arg0, %c0_i32, %c0_i32_0 : i32, i32, i32
  }
  func.func @transform_14(%arg0: i32) -> (i32, i32, i32) {
    %c0_i32 = arith.constant 0 : i32
    %c0_i32_0 = arith.constant 0 : i32
    %c0_i32_1 = arith.constant 0 : i32
    return %arg0, %c0_i32, %c0_i32_0 : i32, i32, i32
  }
}

</mosaic_0001>

<bundles_post_ra>
// kernel: tpu_custom_call.1
= control target key start
LH: loop header
LB: loop body
LE: loop exit
PB: predicated region body
PF: predicated region fallthrough
CT: control target
= control target key end

     0   :  { %20 = vsyncpa [#allocation3], 0  ;;  %s3961_s0 = inlined_call_operand.hbm [shape: f32[2,8,64], index: 0, kind: input, shape index: {}]   ;;  %s3962_s1 = inlined_call_operand.hbm [shape: f32[2,8,64], index: 1, kind: input, shape index: {}]   ;;  %s3963_s2 = inlined_call_operand.hbm [shape: f32[64,192], index: 2, kind: input, shape index: {}]   ;;  %s3964_s3 = inlined_call_operand.vmem [shape: f32[1,192], index: 3, kind: input, shape index: {}]   ;;  %s3965_s4 = inlined_call_operand.vmem [shape: f32[3,64,64], index: 4, kind: input, shape index: {}]   ;;  %s3966_s5 = inlined_call_operand.hbm [shape: f32[64,128], index: 5, kind: input, shape index: {}]   ;;  %s3967_s6 = inlined_call_operand.hbm [shape: f32[64,128], index: 6, kind: input, shape index: {}]   ;;  %s3968_s7 = inlined_call_operand.vmem [shape: f32[128,64], index: 7, kind: input, shape index: {}]   ;;  %s3969_s8 = inlined_call_operand.vmem [shape: f32[2,128], index: 8, kind: input, shape index: {}]   ;;  %s3970_s9 = inlined_call_operand.vmem [shape: f32[10,64], index: 9, kind: input, shape index: {}]   ;;  %s3971_s10 = inlined_call_operand.hbm [shape: f32[2,8,64], index: 10, kind: output, shape index: {0}]   ;;  %s3972_s11 = inlined_call_operand.hbm [shape: f32[2,8,64], index: 11, kind: output, shape index: {1}]   ;;  %s3973_s12 = inlined_call_operand.hbm [shape: f32[2,8,64], index: 12, kind: output, shape index: {2}]   ;;  %s3974_s13 = inlined_call_operand.hbm [shape: f32[2,8,64], index: 13, kind: output, shape index: {3}]   ;;  %s3975_s14 = inlined_call_operand.hbm [shape: f32[2,8,64], index: 14, kind: output, shape index: {4}]  }
   0x1   :  { %21 = vsyncpa [#allocation6], 0 }
   0x2   :  { %22 = vsyncpa [#allocation9], 0 }
   0x3   :  { %23 = vsyncpa [#allocation4], 0 }
   0x4   :  { %24 = vsyncpa [#allocation13], 0 }
   0x5   :  { %25 = vsyncpa [#allocation16], 0  ;;  %s3317_s29 = smov [#allocation5]   ;;  %s3318_s15 = smov [#allocation8]  }
   0x6   :  { %s43_s30 = sshll.u32 %s3317_s29, 4  ;;  %s71_s16 = sshll.u32 %s3318_s15, 4  ;;  %s44_s30 = int_to_ptr.vmem [resolvable:$true] %s43_s30  ;;  %s3410_s16 = int_to_ptr.vmem [resolvable:$true] %s71_s16 }
   0x7   :  { %s3085_s19 = scalar_lea.hbm %s3962_s1, 256 }
   0x8   :  { %p3086_p0 = scmp.ne.s32.totalorder %s3962_s1, %s3085_s19  ;;  %p3089_p1 = scmp.lt.u32.totalorder %s3085_s19, %s3962_s1 }
   0xa   :  { %p3091_p2 = pnand %p3089_p1, %p3086_p0 }
   0xc   :  { %3094 = shalt.err (!%p3091_p2)
}
   0xd   :  { %s3095_s24 = scalar_lea.vmem %s44_s30, 256  ;;  %p3100_p4 = scmp.lt.s32.totalorder %s44_s30, %s44_s30 }
   0xe   :  { %p3096_p3 = scmp.ne.s32.totalorder %s44_s30, %s3095_s24  ;;  %p3101_p5 = scmp.lt.s32.totalorder %s3095_s24, %s3095_s24 }
  0x10   :  { %p3102_p6 = por %p3101_p5, %p3100_p4 }
  0x12   :  { %p3103_p7 = pnand %p3102_p6, %p3096_p3 }
  0x14   :  { %3106 = shalt.err (!%p3103_p7)
}
  0x15   :  { %s3319_s25 = smov 128   ;;  %s3320_s26 = smov 8  }
  0x16   :  { %49 = dma.hbm_to_vmem [thread:$0]  %s3962_s1, 256, %s44_s30, [#allocation6], %s3319_s25, %s3319_s25, %s3320_s26  }
  0x17   :  { %s3107_s17 = scalar_lea.hbm %s3966_s5, 1024 }
  0x18   :  { %p3108_p8 = scmp.ne.s32.totalorder %s3966_s5, %s3107_s17  ;;  %p3111_p9 = scmp.lt.u32.totalorder %s3107_s17, %s3966_s5 }
  0x1a   :  { %p3113_p10 = pnand %p3111_p9, %p3108_p8 }
  0x1c   :  { %3116 = shalt.err (!%p3113_p10)
}
  0x1d   :  { %s3117_s22 = scalar_lea.vmem %s3410_s16, 1024  ;;  %p3122_p12 = scmp.lt.s32.totalorder %s3410_s16, %s3410_s16 }
  0x1e   :  { %p3118_p11 = scmp.ne.s32.totalorder %s3410_s16, %s3117_s22  ;;  %p3123_p13 = scmp.lt.s32.totalorder %s3117_s22, %s3117_s22 }
  0x20   :  { %p3124_p0 = por %p3123_p13, %p3122_p12 }
  0x22   :  { %p3125_p1 = pnand %p3124_p0, %p3118_p11 }
  0x24   :  { %3128 = shalt.err (!%p3125_p1)
}
  0x25   :  { %77 = dma.hbm_to_vmem [thread:$0]  %s3966_s5, 1024, %s3410_s16, [#allocation9], %s3319_s25, %s3319_s25, %s3320_s26  }
  0x26   :  { %s3321_s23 = smov [#allocation2]   ;;  %s3322_s27 = smov [#allocation7]  }
  0x27   :  { %s31_s24 = sshll.u32 %s3321_s23, 4  ;;  %s55_s28 = sshll.u32 %s3322_s27, 4  ;;  %s32_s24 = int_to_ptr.vmem [resolvable:$true] %s31_s24  ;;  %s3447_s28 = int_to_ptr.vmem [resolvable:$true] %s55_s28 }
  0x28   :  { %s3129_s17 = scalar_lea.hbm %s3961_s0, 256 }
  0x29   :  { %p3130_p2 = scmp.ne.s32.totalorder %s3961_s0, %s3129_s17  ;;  %p3133_p3 = scmp.lt.u32.totalorder %s3129_s17, %s3961_s0 }
  0x2b   :  { %p3135_p4 = pnand %p3133_p3, %p3130_p2 }
  0x2d   :  { %3138 = shalt.err (!%p3135_p4)
}
  0x2e   :  { %s3139_s5 = scalar_lea.vmem %s32_s24, 256  ;;  %p3144_p6 = scmp.lt.s32.totalorder %s32_s24, %s32_s24 }
  0x2f   :  { %p3140_p5 = scmp.ne.s32.totalorder %s32_s24, %s3139_s5  ;;  %p3145_p7 = scmp.lt.s32.totalorder %s3139_s5, %s3139_s5 }
  0x31   :  { %p3146_p8 = por %p3145_p7, %p3144_p6 }
  0x33   :  { %p3147_p9 = pnand %p3146_p8, %p3140_p5 }
  0x35   :  { %3150 = shalt.err (!%p3147_p9)
}
  0x36   :  { %37 = dma.hbm_to_vmem [thread:$0]  %s3961_s0, 256, %s32_s24, [#allocation3], %s3319_s25, %s3319_s25, %s3320_s26  }
  0x37   :  { %s3151_s23 = scalar_lea.hbm %s3963_s2, 2048 }
  0x38   :  { %p3152_p10 = scmp.ne.s32.totalorder %s3963_s2, %s3151_s23  ;;  %p3155_p11 = scmp.lt.u32.totalorder %s3151_s23, %s3963_s2 }
  0x3a   :  { %p3157_p12 = pnand %p3155_p11, %p3152_p10 }
  0x3c   :  { %3160 = shalt.err (!%p3157_p12)
}
  0x3d   :  { %s3161_s18 = scalar_lea.vmem %s3447_s28, 2048  ;;  %p3166_p0 = scmp.lt.s32.totalorder %s3447_s28, %s3447_s28 }
  0x3e   :  { %p3162_p13 = scmp.ne.s32.totalorder %s3447_s28, %s3161_s18  ;;  %p3167_p1 = scmp.lt.s32.totalorder %s3161_s18, %s3161_s18 }
  0x40   :  { %p3168_p2 = por %p3167_p1, %p3166_p0 }
  0x42   :  { %p3169_p3 = pnand %p3168_p2, %p3162_p13 }
  0x44   :  { %3172 = shalt.err (!%p3169_p3)
}
  0x45   :  { %s3323_s0 = smov 256   ;;  %s3324_s24 = smov 16  }
  0x46   :  { %61 = dma.hbm_to_vmem [thread:$0]  %s3963_s2, 2048, %s3447_s28, [#allocation6], %s3323_s0, %s3323_s0, %s3324_s24  }
  0x47   :  { %s3325_s21 = smov [#allocation10]   ;;  %s3173_s1 = scalar_lea.hbm %s3967_s6, 1024 }
  0x48   :  { %s83_s5 = sshll.u32 %s3325_s21, 4  ;;  %p3174_p4 = scmp.ne.s32.totalorder %s3967_s6, %s3173_s1  ;;  %s84_s5 = int_to_ptr.vmem [resolvable:$true] %s83_s5 }
  0x49   :  { %p3177_p5 = scmp.lt.u32.totalorder %s3173_s1, %s3967_s6 }
  0x4b   :  { %p3179_p6 = pnand %p3177_p5, %p3174_p4 }
  0x4d   :  { %3182 = shalt.err (!%p3179_p6)
}
  0x4e   :  { %s3183_s15 = scalar_lea.vmem %s84_s5, 1024  ;;  %p3188_p8 = scmp.lt.s32.totalorder %s84_s5, %s84_s5 }
  0x4f   :  { %p3184_p7 = scmp.ne.s32.totalorder %s84_s5, %s3183_s15  ;;  %p3189_p9 = scmp.lt.s32.totalorder %s3183_s15, %s3183_s15 }
  0x51   :  { %p3190_p10 = por %p3189_p9, %p3188_p8 }
  0x53   :  { %p3191_p11 = pnand %p3190_p10, %p3184_p7 }
  0x55   :  { %3194 = shalt.err (!%p3191_p11)
}
  0x56   :  { %89 = dma.hbm_to_vmem [thread:$0]  %s3967_s6, 1024, %s84_s5, [#allocation9], %s3319_s25, %s3319_s25, %s3320_s26  }
  0x57   :  { %3305 = dma.done.wait [#allocation3], 256  }
  0x58   :  { %3306 = vsyncadd [#allocation3], 4294967040 }
  0x59   :  { %3307 = dma.done.wait [#allocation6], 2304  }
  0x5a   :  { %3308 = vsyncadd [#allocation6], 4294964992 }
  0x5b   :  { %3309 = dma.done.wait [#allocation9], 2048  }
  0x5c   :  { %3310 = vsyncadd [#allocation9], 4294965248  ;;  %v3326_v0 = vmov 0.0   ;;  %v119_v1 = vld [vmem:[#allocation7 + $0x8] sm:$0xff]  ;;  %v121_v2 = vld [vmem:[#allocation7 + $0x18] sm:$0xff]  ;;  %vm146_vm0 = vcmask 523264   ;;  %v136_v27 = vlaneseq }
  0x5d   :  { %217 = vmatprep.mubr.f32.mxu0 %v3326_v0  ;;  %2671 = vmatprep.subr.mxu1 %v3326_v0  ;;  %v118_v3 = vld [vmem:[#allocation7] sm:$0xff]  ;;  %v2887_v4 = vpack.c.bf16 %v121_v2, %v119_v1  ;;  %v120_v5 = vld [vmem:[#allocation7 + $0x10] sm:$0xff]  ;;  %v123_v6 = vld [vmem:[#allocation7 + $0x28] sm:$0xff]  ;;  %vm3327_vm1 = vmmov 0   ;;  %s3328_s18 = smov 64   ;;  %s3329_s0 = smov 96  }
  0x5e   :  { %v125_v7 = vld [vmem:[#allocation7 + $0x38] sm:$0xff]  ;;  %v2889_v8 = vpack.c.bf16 %v120_v5, %v118_v3  ;;  %v122_v10 = vld [vmem:[#allocation7 + $0x20] sm:$0xff]  ;;  %v124_v11 = vld [vmem:[#allocation7 + $0x30] sm:$0xff]  ;;  %v3508_v28 = vshrl.u32 %v136_v27, 7  ;;  %2673 = vmatprep.mubr.msk.f32.mxu1 %vm3327_vm1, %v3326_v0  ;;  %vm262_vm2 = vcmask 261120   ;;  %v566_v52 = vand.u32 127, %v136_v27 }
  0x5f   :  { %v2891_v9 = vpack.c.bf16 %v125_v7, %v123_v6  ;;  %v127_v12 = vld [vmem:[#allocation7 + $0x48] sm:$0xff]  ;;  %2888 = vmatprep.subr.bf16.mxu0 %v2887_v4  ;;  %v129_v13 = vld [vmem:[#allocation7 + $0x58] sm:$0xff]  ;;  %v2893_v14 = vpack.c.bf16 %v124_v11, %v122_v10  ;;  %v126_v16 = vld [vmem:[#allocation7 + $0x40] sm:$0xff]  ;;  %vm574_vm4 = vcmask 64512   ;;  %s3331_s19 = smov [#allocation15]  }
  0x60   :  { %2890 = vmatpush1.bf16.msra.mxu0 %v2889_v8  ;;  %v2895_v15 = vpack.c.bf16 %v129_v13, %v127_v12  ;;  %v128_v17 = vld [vmem:[#allocation7 + $0x50] sm:$0xff]  ;;  %v131_v18 = vld [vmem:[#allocation7 + $0x68] sm:$0xff]  ;;  %v133_v19 = vld [vmem:[#allocation7 + $0x78] sm:$0xff]  ;;  %v3515_v29 = vsub.s32 0, %v3508_v28  ;;  %v3521_v31 = vsub.s32 1, %v3508_v28  ;;  %vm567_vm3 = vcmp.le.s32.totalorder %v566_v52, %v3508_v28  ;;  %s2471_s20 = sshll.u32 %s3331_s19, 4  ;;  %s3868_s20 = int_to_ptr.vmem [resolvable:$true] %s2471_s20 }
  0x61   :  { %2892 = vmatprep.subr.bf16.mxu0 %v2891_v9  ;;  %v2897_v20 = vpack.c.bf16 %v128_v17, %v126_v16  ;;  %v2899_v21 = vpack.c.bf16 %v133_v19, %v131_v18  ;;  %v130_v22 = vld [vmem:[#allocation7 + $0x60] sm:$0xff]  ;;  %v132_v23 = vld [vmem:[#allocation7 + $0x70] sm:$0xff]  ;;  %v3504_v26 = vld [vmem:[#allocation2 + $0x8] sm:$0xff] }
  0x62   :  { %v2901_v24 = vpack.c.bf16 %v132_v23, %v130_v22  ;;  %v3498_v25 = vld [vmem:[#allocation2] sm:$0xff] }
  0x63   :  { %v134_v30 = vld [vmem:[%s3964_s3] sm:$0x3] }
  0x64   :  { %2894 = vmatpush1.bf16.msra.mxu0 %v2893_v14  ;;  %v139_v32 = vrot.slane %v134_v30, %v3515_v29  ;;  %v143_v33 = vrot.slane %v134_v30, %v3521_v31 }
  0x65   :  { %2896 = vmatprep.subr.bf16.mxu0 %v2895_v15 }
  0x68   :  { %2898 = vmatpush1.bf16.msra.mxu0 %v2897_v20 }
  0x69   :  { %2900 = vmatprep.subr.bf16.mxu0 %v2899_v21 }
  0x6c   :  { %2902 = vmatpush1.bf16.msra.mxu0 %v2901_v24 }
  0x6d   :  { %2696 = vmatprep.subr.mxu0 %v3326_v0 }
  0x6f   :  { %2511 = vmatmul.mubr.msk.f32.vlgmr.msra.gmra.mrb[0].mxu0 %vm146_vm0, %v3498_v25 }
  0x70   :  { %223 = vmatprep.mubr.f32.mxu0 %v3326_v0 }
  0x73   :  { %2512 = vmatmul.mubr.msk.f32.gmra.mrb[2].mxu0 %vm146_vm0, %v3504_v26 }
  0x74   :  { %2698 = vmatprep.mubr.msk.f32.mxu0 %vm3327_vm1, %v3326_v0 }
 0x142   :  { %v219_v34 = vpop.f32.mrb[0].mxu0 }
 0x143   :  { %v220_v35 = vadd.f32 %v219_v34, %v139_v32  ;;  %v221_v36 = vpop.f32.mrb[1].mxu0 }
 0x144   :  { %v3525_v37 = vadd.f32 %v221_v36, %v143_v33 }
 0x145   :  { %232 = vrot.lane.b32.xlu1 %v220_v35, %s3328_s18  ;;  %250 = vrot.lane.b32.xlu0 %v220_v35, %s3329_s0  ;;  %v242_v42 = vmul.f32 0.17677669, %v220_v35 }
 0x146   :  { %240 = vst.msk [vmem:[#allocation14] sm:$0xff] %vm146_vm0, %v3525_v37  ;;  %v225_v38 = vpop.f32.mrb[2].mxu0 }
 0x147   :  { %v226_v39 = vadd.f32 %v225_v38, %v139_v32  ;;  %v227_v40 = vpop.f32.mrb[3].mxu0  ;;  %v912_v38 = vld [vmem:[%s3965_s4 + $0x8] sm:$0xff] }
 0x148   :  { %v3531_v41 = vadd.f32 %v227_v40, %v143_v33 }
 0x149   :  { %234 = vrot.lane.b32.xlu1 %v226_v39, %s3328_s18  ;;  %252 = vrot.lane.b32.xlu0 %v226_v39, %s3329_s0  ;;  %v243_v43 = vmul.f32 0.17677669, %v226_v39 }
 0x14a   :  { %241 = vst.msk [vmem:[#allocation14 + $0x8] sm:$0xff] %vm146_vm0, %v3531_v41  ;;  %2697 = vmatpush3.msra.mxu0 %v3531_v41 }
 0x14b   :  { %2706 = vmatprep.subr.mxu0 %v3326_v0 }
 0x14d   :  { %246 = vrot.lane.b32.xlu1 %v242_v42, %s3329_s0 }
 0x151   :  { %248 = vrot.lane.b32.xlu1 %v243_v43, %s3329_s0 }
 0x1b7   :  { %v233_v44 = vpop.permute.xlu1 %232  ;;  %v251_v45 = vpop.permute.xlu0 %250 }
 0x1b8   :  { %238 = vst.msk [vmem:[#allocation12] sm:$0xff] %vm146_vm0, %v233_v44  ;;  %2672 = vmatpush3.xpose.msk.msra.mxu1 %vm262_vm2, %v233_v44  ;;  %411 = vrot.lane.b32.xlu0 %v251_v45, %s3328_s18  ;;  %v913_v44 = vld [vmem:[%s3965_s4 + $0x10] sm:$0xff]  ;;  %v914_v45 = vld [vmem:[%s3965_s4 + $0x18] sm:$0xff] }
 0x1b9   :  { %2676 = vmatprep.subr.mxu1 %v3326_v0 }
 0x1bb   :  { %v235_v46 = vpop.permute.xlu1 %234  ;;  %v253_v47 = vpop.permute.xlu0 %252  ;;  %2674 = vmatmul.mubr.msk.f32.vlgmr.msra.gmra.mrb[0].mxu1 %vm262_vm2, %v242_v42 }
 0x1bc   :  { %239 = vst.msk [vmem:[#allocation12 + $0x8] sm:$0xff] %vm146_vm0, %v235_v46  ;;  %487 = vrot.lane.b32.xlu0 %v253_v47, %s3328_s18  ;;  %2677 = vmatpush3.xpose.msk.msra.mxu1 %vm262_vm2, %v235_v46 }
 0x1bd   :  { %2678 = vmatprep.mubr.msk.f32.mxu1 %vm3327_vm1, %v3326_v0  ;;  %2681 = vmatprep.subr.mxu1 %v3326_v0 }
 0x1bf   :  { %2679 = vmatmul.mubr.msk.f32.vlgmr.msra.gmra.mrb[2].mxu1 %vm262_vm2, %v243_v43  ;;  %v247_v49 = vpop.permute.xlu1 %246 }
 0x1c0   :  { %2683 = vmatprep.mubr.msk.f32.mxu1 %vm3327_vm1, %v3326_v0 }
 0x1c3   :  { %v249_v51 = vpop.permute.xlu1 %248 }
 0x22a   :  { %v412_v48 = vpop.permute.xlu0 %411 }
 0x22b   :  { %2682 = vmatpush3.xpose.msk.msra.mxu1 %vm262_vm2, %v412_v48  ;;  %v2907_v48 = vpack.c.bf16 %v914_v45, %v913_v44 }
 0x22c   :  { %2686 = vmatprep.subr.mxu1 %v3326_v0 }
 0x22e   :  { %v488_v50 = vpop.permute.xlu0 %487  ;;  %2684 = vmatmul.mubr.msk.f32.vlgmr.msra.gmra.mrb[4].mxu1 %vm262_vm2, %v247_v49  ;;  %v915_v49 = vld [vmem:[%s3965_s4 + $0x20] sm:$0xff] }
 0x22f   :  { %2687 = vmatpush3.xpose.msk.msra.mxu1 %vm262_vm2, %v488_v50  ;;  %2688 = vmatprep.mubr.msk.f32.mxu1 %vm3327_vm1, %v3326_v0  ;;  %v916_v50 = vld [vmem:[%s3965_s4 + $0x28] sm:$0xff] }
 0x230   :  { %2691 = vmatprep.subr.mxu1 %v3326_v0 }
 0x232   :  { %2689 = vmatmul.mubr.msk.f32.vlgmr.msra.gmra.mrb[6].mxu1 %vm262_vm2, %v249_v51 }
 0x233   :  { %2692 = vmatpush3.msra.mxu1 %v3525_v37  ;;  %2693 = vmatprep.mubr.msk.f32.mxu1 %vm3327_vm1, %v3326_v0 }
 0x234   :  { %2701 = vmatprep.subr.mxu1 %v3326_v0 }
 0x28e   :  { %v333_v53 = vpop.f32.mrb[0].mxu1 }
 0x28f   :  { %v570_v54 = vsel %vm567_vm3, %v333_v53, -1e+30  ;;  %v2675_v55 = vpop.f32.mrb[1].mxu1  ;;  %v2911_v53 = vpack.c.bf16 %v916_v50, %v915_v49 }
 0x290   :  { %v575_v56 = vsel %vm574_vm4, %v570_v54, -inf  ;;  %v917_v55 = vld [vmem:[%s3965_s4 + $0x30] sm:$0xff] }
 0x291   :  { %576 = vmax.xlane.f32.xlu0 %v575_v56  ;;  %v918_v56 = vld [vmem:[%s3965_s4 + $0x38] sm:$0xff] }
 0x292   :  { %v407_v57 = vpop.f32.mrb[2].mxu1 }
 0x293   :  { %v571_v58 = vsel %vm567_vm3, %v407_v57, -1e+30  ;;  %v2680_v59 = vpop.f32.mrb[3].mxu1 }
 0x294   :  { %v578_v60 = vsel %vm574_vm4, %v571_v58, -inf }
 0x295   :  { %579 = vmax.xlane.f32.xlu1 %v578_v60 }
 0x301   :  { %v483_v61 = vpop.f32.mrb[4].mxu1 }
 0x302   :  { %v572_v62 = vsel %vm567_vm3, %v483_v61, -1e+30  ;;  %v2685_v63 = vpop.f32.mrb[5].mxu1 }
 0x303   :  { %v581_v1 = vsel %vm574_vm4, %v572_v62, -inf }
 0x304   :  { %582 = vmax.xlane.f32.xlu0 %v581_v1 }
 0x305   :  { %v559_v2 = vpop.f32.mrb[6].mxu1 }
 0x306   :  { %v573_v3 = vsel %vm567_vm3, %v559_v2, -1e+30  ;;  %v2690_v4 = vpop.f32.mrb[7].mxu1  ;;  %v3630_v2 = vld [vmem:[%s3970_s9] sm:$0xff] }
 0x307   :  { %v584_v5 = vsel %vm574_vm4, %v573_v3, -inf }
 0x308   :  { %585 = vmax.xlane.f32.xlu0 %v584_v5 }
 0x31e   :  { %v577_v6 = vpop.xlane.xlu0 %576 }
 0x31f   :  { %v587_v7 = vsub.f32 %v570_v54, %v577_v6 }
 0x321   :  { %v591_v8 = vmul.f32 1.442695, %v587_v7 }
 0x322   :  { %v580_v9 = vpop.xlane.xlu1 %579 }
 0x323   :  { %3041 = vpow2.f32 %v591_v8  ;;  %v588_v10 = vsub.f32 %v571_v58, %v580_v9  ;;  %v2915_v58 = vpack.c.bf16 %v918_v56, %v917_v55 }
 0x325   :  { %v593_v11 = vmul.f32 1.442695, %v588_v10 }
 0x327   :  { %3043 = vpow2.f32 %v593_v11 }
 0x32d   :  { %v3042_v12 = vpop.eup %3041 }
 0x32e   :  { %v599_v13 = vsel %vm574_vm4, %v3042_v12, 0.0 }
 0x32f   :  { %600 = vadd.xlane.f32.xlu1 %v599_v13 }
 0x331   :  { %v3044_v14 = vpop.eup %3043 }
 0x332   :  { %v602_v15 = vsel %vm574_vm4, %v3044_v14, 0.0 }
 0x333   :  { %603 = vadd.xlane.f32.xlu0 %v602_v15 }
 0x391   :  { %v583_v16 = vpop.xlane.xlu0 %582 }
 0x392   :  { %v589_v17 = vsub.f32 %v572_v62, %v583_v16 }
 0x394   :  { %v595_v18 = vmul.f32 1.442695, %v589_v17 }
 0x395   :  { %v586_v19 = vpop.xlane.xlu0 %585 }
 0x396   :  { %3045 = vpow2.f32 %v595_v18  ;;  %v590_v20 = vsub.f32 %v573_v3, %v586_v19  ;;  %v1003_v3 = vrot.slane %v3630_v2, %v3515_v29 }
 0x398   :  { %v597_v21 = vmul.f32 1.442695, %v590_v20  ;;  %v2529_v20 = vld [vmem:[%s3965_s4 + $0x40] sm:$0xff] }
 0x39a   :  { %3047 = vpow2.f32 %v597_v21  ;;  %v2530_v21 = vld [vmem:[%s3965_s4 + $0x48] sm:$0xff] }
 0x3a0   :  { %v3046_v22 = vpop.eup %3045 }
 0x3a1   :  { %v605_v23 = vsel %vm574_vm4, %v3046_v22, 0.0 }
 0x3a2   :  { %606 = vadd.xlane.f32.xlu1 %v605_v23  ;;  %v2531_v23 = vld [vmem:[%s3965_s4 + $0x50] sm:$0xff] }
 0x3a4   :  { %v3048_v24 = vpop.eup %3047 }
 0x3a5   :  { %v608_v27 = vsel %vm574_vm4, %v3048_v24, 0.0 }
 0x3a6   :  { %609 = vadd.xlane.f32.xlu0 %v608_v27 }
 0x3b3   :  { %256 = vrot.lane.b32.xlu1 %v3525_v37, %s3329_s0  ;;  %v911_v37 = vld [vmem:[%s3965_s4] sm:$0xff] }
 0x3b4   :  { %v2903_v40 = vpack.c.bf16 %v912_v38, %v911_v37  ;;  %v1224_v37 = vld [vmem:[#allocation8] sm:$0xff]  ;;  %v1225_v38 = vld [vmem:[#allocation8 + $0x8] sm:$0xff] }
 0x3bc   :  { %v601_v30 = vpop.xlane.xlu1 %600  ;;  %258 = vrot.lane.b32.xlu0 %v3531_v41, %s3329_s0 }
 0x3bd   :  { %3049 = vrcp.f32 %v601_v30  ;;  %v2533_v30 = vld [vmem:[%s3965_s4 + $0x60] sm:$0xff] }
 0x3c0   :  { %v604_v32 = vpop.xlane.xlu0 %603 }
 0x3c1   :  { %3051 = vrcp.f32 %v604_v32  ;;  %v2534_v32 = vld [vmem:[%s3965_s4 + $0x68] sm:$0xff] }
 0x3c7   :  { %v3050_v33 = vpop.eup %3049 }
 0x3c8   :  { %v615_v34 = vmul.f32 %v3050_v33, %v3042_v12  ;;  %v2927_v33 = vpack.c.bf16 %v2534_v32, %v2533_v30 }
 0x3ca   :  { %2694 = vmatmul.mubr.msk.f32.vlgmr.msra.gmra.mrb[8].mxu1 %vm574_vm4, %v615_v34  ;;  %v2535_v34 = vld [vmem:[%s3965_s4 + $0x70] sm:$0xff] }
 0x3cb   :  { %v3052_v35 = vpop.eup %3051  ;;  %2703 = vmatprep.mubr.msk.f32.mxu1 %vm3327_vm1, %v3326_v0 }
 0x3cc   :  { %v616_v36 = vmul.f32 %v3052_v35, %v3044_v14  ;;  %v2536_v35 = vld [vmem:[%s3965_s4 + $0x78] sm:$0xff] }
 0x3ce   :  { %2699 = vmatmul.mubr.msk.f32.vlgmr.msra.gmra.mrb[4].mxu0 %vm574_vm4, %v616_v36  ;;  %v2931_v36 = vpack.c.bf16 %v2536_v35, %v2535_v34 }
 0x3cf   :  { %2708 = vmatprep.mubr.msk.f32.mxu0 %vm3327_vm1, %v3326_v0 }
 0x42f   :  { %v607_v39 = vpop.xlane.xlu1 %606 }
 0x430   :  { %3053 = vrcp.f32 %v607_v39  ;;  %v2935_v39 = vpack.c.bf16 %v1225_v38, %v1224_v37 }
 0x433   :  { %v257_v41 = vpop.permute.xlu1 %256  ;;  %v610_v42 = vpop.xlane.xlu0 %609 }
 0x434   :  { %3055 = vrcp.f32 %v610_v42  ;;  %2702 = vmatpush3.msra.mxu1 %v257_v41 }
 0x435   :  { %2904 = vmatprep.subr.bf16.mxu1 %v2903_v40 }
 0x437   :  { %v259_v43 = vpop.permute.xlu0 %258 }
 0x438   :  { %2707 = vmatpush3.msra.mxu0 %v259_v43 }
 0x43a   :  { %v3054_v46 = vpop.eup %3053 }
 0x43b   :  { %v617_v47 = vmul.f32 %v3054_v46, %v3046_v22  ;;  %v2919_v22 = vpack.c.bf16 %v2530_v21, %v2529_v20  ;;  %v1118_v46 = vsub.s32 4, %v3508_v28 }
 0x43d   :  { %2704 = vmatmul.mubr.msk.f32.vlgmr.msra.gmra.mrb[10].mxu1 %vm574_vm4, %v617_v47  ;;  %2920 = vmatprep.subr.bf16.mxu0 %v2919_v22  ;;  %v1124_v47 = vsub.s32 5, %v3508_v28 }
 0x43e   :  { %v3056_v51 = vpop.eup %3055  ;;  %2906 = vmatpush3.bf16.msra.mxu1 %v2903_v40 }
 0x43f   :  { %v618_v52 = vmul.f32 %v3056_v51, %v3048_v24  ;;  %2908 = vmatprep.subr.bf16.mxu1 %v2907_v48  ;;  %v2532_v24 = vld [vmem:[%s3965_s4 + $0x58] sm:$0xff] }
 0x440   :  { %v2923_v27 = vpack.c.bf16 %v2532_v24, %v2531_v23 }
 0x441   :  { %2709 = vmatmul.mubr.msk.f32.vlgmr.msra.gmra.mrb[6].mxu0 %vm574_vm4, %v618_v52  ;;  %v1125_v52 = vrot.slane %v3630_v2, %v1124_v47 }
 0x442   :  { %2910 = vmatpush3.bf16.msra.mxu1 %v2907_v48  ;;  %2922 = vmatpush3.bf16.msra.mxu0 %v2919_v22  ;;  %v1119_v48 = vrot.slane %v3630_v2, %v1118_v46 }
 0x443   :  { %2912 = vmatprep.subr.bf16.mxu1 %v2911_v53  ;;  %2924 = vmatprep.subr.bf16.mxu0 %v2923_v27 }
 0x446   :  { %2926 = vmatpush3.bf16.msra.mxu0 %v2923_v27 }
 0x447   :  { %2928 = vmatprep.subr.bf16.mxu0 %v2927_v33 }
 0x44a   :  { %2930 = vmatpush3.bf16.msra.mxu0 %v2927_v33 }
 0x44b   :  { %2932 = vmatprep.subr.bf16.mxu0 %v2931_v36 }
 0x44e   :  { %2934 = vmatpush3.bf16.msra.mxu0 %v2931_v36 }
 0x44f   :  { %2936 = vmatprep.subr.bf16.mxu0 %v2935_v39 }
 0x49d   :  { %v688_v54 = vpop.f32.mrb[8].mxu1 }
 0x49e   :  { %v2695_v57 = vpop.f32.mrb[9].mxu1  ;;  %2719 = vmatprep.mubr.msk.f32.mxu1 %vm262_vm2, %v688_v54 }
 0x4a1   :  { %v761_v59 = vpop.f32.mrb[4].mxu0 }
 0x4a2   :  { %v2700_v60 = vpop.f32.mrb[5].mxu0  ;;  %2720 = vmatmul.mubr.msk.f32.vlgmr.msra.gmra.mrb[12].mxu1 %vm262_vm2, %v761_v59  ;;  %v1227_v59 = vld [vmem:[#allocation8 + $0x18] sm:$0xff] }
 0x4a3   :  { %2914 = vmatpush3.bf16.msra.mxu1 %v2911_v53 }
 0x4a4   :  { %2916 = vmatprep.subr.bf16.mxu1 %v2915_v58 }
 0x4a7   :  { %2918 = vmatpush3.bf16.msra.mxu1 %v2915_v58  ;;  %v1226_v58 = vld [vmem:[#allocation8 + $0x10] sm:$0xff] }
 0x4a8   :  { %2791 = vmatprep.subr.mxu1 %v3326_v0 }
 0x510   :  { %v834_v61 = vpop.f32.mrb[10].mxu1 }
 0x511   :  { %v2705_v62 = vpop.f32.mrb[11].mxu1  ;;  %2730 = vmatprep.mubr.msk.f32.mxu1 %vm262_vm2, %v834_v61 }
 0x512   :  { %v2939_v62 = vpack.c.bf16 %v1227_v59, %v1226_v58 }
 0x514   :  { %v907_v63 = vpop.f32.mrb[6].mxu0 }
 0x515   :  { %v2710_v1 = vpop.f32.mrb[7].mxu0  ;;  %2731 = vmatmul.mubr.msk.f32.vlgmr.msra.gmra.mrb[12].mxu1 %vm262_vm2, %v907_v63  ;;  %v116_v63 = vld [vmem:[#allocation5] sm:$0xff] }
 0x516   :  { %2793 = vmatprep.mubr.msk.f32.mxu1 %vm3327_vm1, %v3326_v0  ;;  %v1228_v1 = vld [vmem:[#allocation8 + $0x20] sm:$0xff] }
 0x5e8   :  { %v2732_v4 = vpop.f32.mrb[12].mxu1 }
 0x5e9   :  { %v3015_v5 = vadd.f32 %v2732_v4, %v1003_v3  ;;  %v1078_v6 = vpop.f32.mrb[13].mxu1 }
 0x5ea   :  { %v3016_v7 = vadd.f32 %v1078_v6, %v1003_v3  ;;  %v1229_v3 = vld [vmem:[#allocation8 + $0x28] sm:$0xff]  ;;  %v117_v6 = vld [vmem:[#allocation5 + $0x8] sm:$0xff] }
 0x5eb   :  { %v1092_v8 = vsel %vm146_vm0, %v3015_v5, 0.0  ;;  %v2943_v4 = vpack.c.bf16 %v1229_v3, %v1228_v1 }
 0x5ec   :  { %1093 = vadd.xlane.f32.xlu0 %v1092_v8  ;;  %v1089_v9 = vsel %vm146_vm0, %v3016_v7, 0.0 }
 0x5ed   :  { %1090 = vadd.xlane.f32.xlu1 %v1089_v9 }
 0x679   :  { %v1094_v10 = vpop.xlane.xlu0 %1093 }
 0x67a   :  { %v1097_v11 = vmul.f32 0.015625, %v1094_v10  ;;  %v1091_v12 = vpop.xlane.xlu1 %1090 }
 0x67b   :  { %v1096_v13 = vmul.f32 0.015625, %v1091_v12  ;;  %v3687_v12 = vld [vmem:[%s3969_s8] sm:$0x3] }
 0x67c   :  { %v1099_v14 = vsub.f32 %v3015_v5, %v1097_v11  ;;  %v1231_v5 = vld [vmem:[#allocation8 + $0x38] sm:$0xff] }
 0x67d   :  { %v1098_v15 = vsub.f32 %v3016_v7, %v1096_v13  ;;  %v1142_v7 = vrot.slane %v3630_v2, %v3521_v31  ;;  %v1235_v13 = vrot.slane %v3687_v12, %v3515_v29 }
 0x67e   :  { %v1101_v16 = vmul.f32 %v1099_v14, %v1099_v14 }
 0x67f   :  { %v1100_v17 = vmul.f32 %v1098_v15, %v1098_v15 }
 0x680   :  { %v1105_v18 = vsel %vm146_vm0, %v1101_v16, 0.0 }
 0x681   :  { %1106 = vadd.xlane.f32.xlu0 %v1105_v18  ;;  %v1102_v19 = vsel %vm146_vm0, %v1100_v17, 0.0 }
 0x682   :  { %1103 = vadd.xlane.f32.xlu1 %v1102_v19 }
 0x70e   :  { %v1107_v40 = vpop.xlane.xlu0 %1106 }
 0x70f   :  { %v1109_v41 = vmul.f32 0.015625, %v1107_v40  ;;  %v1104_v42 = vpop.xlane.xlu1 %1103 }
 0x710   :  { %v1108_v43 = vmul.f32 0.015625, %v1104_v42 }
 0x711   :  { %v1111_v44 = vadd.f32 1e-05, %v1109_v41 }
 0x712   :  { %v1110_v45 = vadd.f32 1e-05, %v1108_v43 }
 0x713   :  { %3057 = vrsqrt.f32 %v1111_v44 }
 0x714   :  { %3059 = vrsqrt.f32 %v1110_v45 }
 0x71d   :  { %v3058_v49 = vpop.eup %3057 }
 0x71e   :  { %v3060_v50 = vpop.eup %3059  ;;  %v1115_v51 = vmul.f32 %v3058_v49, %v1099_v14 }
 0x71f   :  { %v1114_v53 = vmul.f32 %v3060_v50, %v1098_v15 }
 0x720   :  { %v1121_v54 = vmul.f32 %v1119_v48, %v1115_v51 }
 0x721   :  { %v1120_v55 = vmul.f32 %v1119_v48, %v1114_v53 }
 0x722   :  { %v1127_v56 = vadd.f32 %v1125_v52, %v1121_v54 }
 0x723   :  { %v1126_v57 = vadd.f32 %v1125_v52, %v1120_v55 }
 0x724   :  { %v3670_v61 = vadd.f32 %v1127_v56, %v3504_v26 }
 0x725   :  { %v3667_v60 = vadd.f32 %v1126_v57, %v3498_v25  ;;  %v1230_v25 = vld [vmem:[#allocation8 + $0x30] sm:$0xff] }
 0x726   :  { %v2947_v26 = vpack.c.bf16 %v1231_v5, %v1230_v25  ;;  %v2553_v5 = vld [vmem:[%s3965_s4 + $0x80] sm:$0xff] }
 0x727   :  { %2749 = vmatprep.mubr.msk.f32.mxu0 %vm146_vm0, %v3667_v60 }
 0x728   :  { %2750 = vmatmul.mubr.msk.f32.vlgmr.msra.gmra.mrb[8].mxu0 %vm146_vm0, %v3670_v61 }
 0x729   :  { %2938 = vmatpush3.bf16.msra.mxu0 %v2935_v39  ;;  %2768 = vmatprep.mubr.msk.f32.mxu0 %vm146_vm0, %v116_v63 }
 0x72a   :  { %2940 = vmatprep.subr.bf16.mxu0 %v2939_v62 }
 0x72d   :  { %2942 = vmatpush3.bf16.msra.mxu0 %v2939_v62 }
 0x72e   :  { %2944 = vmatprep.subr.bf16.mxu0 %v2943_v4 }
 0x731   :  { %2946 = vmatpush3.bf16.msra.mxu0 %v2943_v4 }
 0x732   :  { %2948 = vmatprep.subr.bf16.mxu0 %v2947_v26 }
 0x735   :  { %2950 = vmatpush3.bf16.msra.mxu0 %v2947_v26  ;;  %v2554_v26 = vld [vmem:[%s3965_s4 + $0x88] sm:$0xff] }
 0x736   :  { %2771 = vmatprep.subr.mxu0 %v3326_v0 }
 0x738   :  { %2769 = vmatmul.mubr.msk.f32.vlgmr.msra.gmra.mrb[10].mxu0 %vm146_vm0, %v117_v6 }
 0x739   :  { %2773 = vmatprep.mubr.msk.f32.mxu0 %vm3327_vm1, %v3326_v0 }
 0x7fb   :  { %v2751_v8 = vpop.f32.mrb[8].mxu0 }
 0x7fc   :  { %v1215_v9 = vpop.f32.mrb[9].mxu0  ;;  %v1221_v18 = vadd.f32 %v2751_v8, %v1142_v7 }
 0x7fd   :  { %v1216_v10 = vadd.f32 %v1215_v9, %v1142_v7  ;;  %v2951_v7 = vpack.c.bf16 %v2554_v26, %v2553_v5  ;;  %v2204_v26 = vld [vmem:[#allocation10 + $0x30] sm:$0xff] }
 0x7fe   :  { %v1330_v19 = vmul.f32 0.17677669, %v1221_v18 }
 0x7ff   :  { %v1329_v11 = vmul.f32 0.17677669, %v1216_v10 }
 0x801   :  { %1333 = vrot.lane.b32.xlu0 %v1329_v11, %s3329_s0 }
 0x80b   :  { %v2770_v14 = vpop.f32.mrb[10].mxu0 }
 0x80c   :  { %v3691_v15 = vadd.f32 %v2770_v14, %v1235_v13  ;;  %v1308_v16 = vpop.f32.mrb[11].mxu0  ;;  %v2555_v14 = vld [vmem:[%s3965_s4 + $0x90] sm:$0xff] }
 0x80d   :  { %v1309_v17 = vadd.f32 %v1308_v16, %v1235_v13 }
 0x80e   :  { %1318 = vst.msk [vmem:[#allocation15 + $0x8] sm:$0xff] %vm146_vm0, %v3691_v15 }
 0x80f   :  { %1317 = vst.msk [vmem:[#allocation15] sm:$0xff] %vm146_vm0, %v1309_v17  ;;  %1337 = vrot.lane.b32.xlu1 %v1309_v17, %s3329_s0  ;;  %2772 = vmatpush3.xpose.msk.msra.mxu0 %vm262_vm2, %v1309_v17 }
 0x810   :  { %2776 = vmatprep.subr.mxu0 %v3326_v0 }
 0x812   :  { %2774 = vmatmul.mubr.msk.f32.vlgmr.msra.gmra.mrb[12].mxu0 %vm262_vm2, %v1329_v11 }
 0x813   :  { %1339 = vrot.lane.b32.xlu1 %v3691_v15, %s3329_s0  ;;  %2777 = vmatpush3.xpose.msk.msra.mxu0 %vm262_vm2, %v3691_v15 }
 0x814   :  { %2778 = vmatprep.mubr.msk.f32.mxu0 %vm3327_vm1, %v3326_v0  ;;  %2781 = vmatprep.subr.mxu0 %v3326_v0 }
 0x816   :  { %2779 = vmatmul.mubr.msk.f32.vlgmr.msra.gmra.mrb[14].mxu0 %vm262_vm2, %v1330_v19 }
 0x817   :  { %1335 = vrot.lane.b32.xlu1 %v1330_v19, %s3329_s0  ;;  %2783 = vmatprep.mubr.msk.f32.mxu0 %vm3327_vm1, %v3326_v0 }
 0x873   :  { %v1334_v21 = vpop.permute.xlu0 %1333 }
 0x881   :  { %v1338_v20 = vpop.permute.xlu1 %1337 }
 0x882   :  { %2782 = vmatpush3.xpose.msk.msra.mxu0 %vm262_vm2, %v1338_v20 }
 0x883   :  { %2786 = vmatprep.subr.mxu0 %v3326_v0 }
 0x885   :  { %v1340_v22 = vpop.permute.xlu1 %1339  ;;  %2784 = vmatmul.mubr.msk.f32.vlgmr.msra.gmra.mrb[16].mxu0 %vm262_vm2, %v1334_v21 }
 0x886   :  { %2787 = vmatpush3.xpose.msk.msra.mxu0 %vm262_vm2, %v1340_v22  ;;  %2788 = vmatprep.mubr.msk.f32.mxu0 %vm3327_vm1, %v3326_v0 }
 0x887   :  { %2796 = vmatprep.subr.mxu0 %v3326_v0 }
 0x889   :  { %v1336_v23 = vpop.permute.xlu1 %1335 }
 0x88a   :  { %2789 = vmatmul.mubr.msk.f32.vlgmr.msra.gmra.mrb[18].mxu0 %vm262_vm2, %v1336_v23  ;;  %v2558_v23 = vld [vmem:[%s3965_s4 + $0xa8] sm:$0xff] }
 0x88b   :  { %2798 = vmatprep.mubr.msk.f32.mxu0 %vm3327_vm1, %v3326_v0 }
 0x8e5   :  { %v1411_v24 = vpop.f32.mrb[12].mxu0 }
 0x8e6   :  { %v2775_v27 = vpop.f32.mrb[13].mxu0  ;;  %v1637_v30 = vsel %vm574_vm4, %v1411_v24, -inf }
 0x8e7   :  { %1638 = vmax.xlane.f32.xlu0 %v1637_v30  ;;  %v2559_v30 = vld [vmem:[%s3965_s4 + $0xb0] sm:$0xff] }
 0x8e9   :  { %v1485_v32 = vpop.f32.mrb[14].mxu0 }
 0x8ea   :  { %v2780_v33 = vpop.f32.mrb[15].mxu0  ;;  %v1640_v34 = vsel %vm574_vm4, %v1485_v32, -inf }
 0x8eb   :  { %1641 = vmax.xlane.f32.xlu1 %v1640_v34 }
 0x8fc   :  { %1321 = vrot.lane.b32.xlu1 %v1309_v17, %s3328_s18 }
 0x958   :  { %v1559_v35 = vpop.f32.mrb[16].mxu0 }
 0x959   :  { %v2785_v36 = vpop.f32.mrb[17].mxu0  ;;  %v1643_v37 = vsel %vm574_vm4, %v1559_v35, -inf }
 0x95a   :  { %1644 = vmax.xlane.f32.xlu0 %v1643_v37 }
 0x95d   :  { %v1633_v38 = vpop.f32.mrb[18].mxu0 }
 0x95e   :  { %v2790_v39 = vpop.f32.mrb[19].mxu0  ;;  %v1646_v40 = vsel %vm574_vm4, %v1633_v38, -inf }
 0x95f   :  { %1647 = vmax.xlane.f32.xlu0 %v1646_v40  ;;  %v2071_v40 = vsub.s32 2, %v3508_v28 }
 0x974   :  { %v1639_v41 = vpop.xlane.xlu0 %1638 }
 0x975   :  { %v1649_v42 = vsub.f32 %v1411_v24, %v1639_v41  ;;  %v2072_v41 = vrot.slane %v3630_v2, %v2071_v40  ;;  %v2186_v40 = vsub.s32 6, %v3508_v28 }
 0x977   :  { %v1653_v43 = vmul.f32 1.442695, %v1649_v42 }
 0x978   :  { %v1642_v44 = vpop.xlane.xlu1 %1641 }
 0x979   :  { %3061 = vpow2.f32 %v1653_v43  ;;  %v1650_v45 = vsub.f32 %v1485_v32, %v1642_v44  ;;  %v2560_v32 = vld [vmem:[%s3965_s4 + $0xb8] sm:$0xff] }
 0x97a   :  { %v2963_v33 = vpack.c.bf16 %v2560_v32, %v2559_v30  ;;  %v2305_v30 = vld [vmem:[%s3968_s7 + $0x60] sm:$0xff]  ;;  %v2306_v32 = vld [vmem:[%s3968_s7 + $0x68] sm:$0xff] }
 0x97b   :  { %v1655_v46 = vmul.f32 1.442695, %v1650_v45 }
 0x97c   :  { %v1322_v47 = vpop.permute.xlu1 %1321 }
 0x97d   :  { %3063 = vpow2.f32 %v1655_v46  ;;  %1327 = vst.msk [vmem:[#allocation17] sm:$0xff] %vm146_vm0, %v1322_v47  ;;  %2792 = vmatpush3.msra.mxu1 %v1322_v47 }
 0x97e   :  { %2801 = vmatprep.subr.mxu1 %v3326_v0 }
 0x983   :  { %v3062_v48 = vpop.eup %3061 }
 0x984   :  { %v1661_v49 = vsel %vm574_vm4, %v3062_v48, 0.0 }
 0x985   :  { %1662 = vadd.xlane.f32.xlu1 %v1661_v49 }
 0x987   :  { %v3064_v50 = vpop.eup %3063 }
 0x988   :  { %v1664_v51 = vsel %vm574_vm4, %v3064_v50, 0.0 }
 0x989   :  { %1665 = vadd.xlane.f32.xlu0 %v1664_v51 }
 0x9e7   :  { %v1645_v52 = vpop.xlane.xlu0 %1644 }
 0x9e8   :  { %v1651_v53 = vsub.f32 %v1559_v35, %v1645_v52 }
 0x9ea   :  { %v1657_v54 = vmul.f32 1.442695, %v1651_v53 }
 0x9ec   :  { %3065 = vpow2.f32 %v1657_v54  ;;  %v1648_v55 = vpop.xlane.xlu0 %1647 }
 0x9ed   :  { %v1652_v56 = vsub.f32 %v1633_v38, %v1648_v55 }
 0x9ef   :  { %v1659_v57 = vmul.f32 1.442695, %v1652_v56 }
 0x9f1   :  { %3067 = vpow2.f32 %v1659_v57 }
 0x9f6   :  { %v3066_v58 = vpop.eup %3065 }
 0x9f7   :  { %v1667_v59 = vsel %vm574_vm4, %v3066_v58, 0.0 }
 0x9f8   :  { %1668 = vadd.xlane.f32.xlu1 %v1667_v59  ;;  %v2199_v59 = vld [vmem:[#allocation10 + $0x8] sm:$0xff] }
 0x9fb   :  { %v3068_v62 = vpop.eup %3067 }
 0x9fc   :  { %v1670_v63 = vsel %vm574_vm4, %v3068_v62, 0.0 }
 0x9fd   :  { %1671 = vadd.xlane.f32.xlu0 %v1670_v63  ;;  %v2200_v63 = vld [vmem:[#allocation10 + $0x10] sm:$0xff] }
 0xa09   :  { %1827 = vrot.lane.b32.xlu1 %v1338_v20, %s3328_s18 }
 0xa0d   :  { %1903 = vrot.lane.b32.xlu1 %v1340_v22, %s3328_s18  ;;  %v2557_v22 = vld [vmem:[%s3965_s4 + $0xa0] sm:$0xff] }
 0xa0e   :  { %v2959_v24 = vpack.c.bf16 %v2558_v23, %v2557_v22  ;;  %v2302_v22 = vld [vmem:[%s3968_s7 + $0x48] sm:$0xff] }
 0xa12   :  { %v1663_v1 = vpop.xlane.xlu1 %1662 }
 0xa13   :  { %3069 = vrcp.f32 %v1663_v1  ;;  %1323 = vrot.lane.b32.xlu0 %v3691_v15, %s3328_s18  ;;  %v2556_v15 = vld [vmem:[%s3965_s4 + $0x98] sm:$0xff] }
 0xa14   :  { %v2955_v19 = vpack.c.bf16 %v2556_v15, %v2555_v14  ;;  %v2201_v1 = vld [vmem:[#allocation10 + $0x18] sm:$0xff]  ;;  %v2297_v15 = vld [vmem:[%s3968_s7 + $0x20] sm:$0xff] }
 0xa16   :  { %v1666_v25 = vpop.xlane.xlu0 %1665 }
 0xa17   :  { %3071 = vrcp.f32 %v1666_v25  ;;  %v2203_v25 = vld [vmem:[#allocation10 + $0x28] sm:$0xff] }
 0xa1d   :  { %v3070_v3 = vpop.eup %3069 }
 0xa1e   :  { %v1677_v4 = vmul.f32 %v3070_v3, %v3062_v48  ;;  %v2971_v3 = vpack.c.bf16 %v2201_v1, %v2200_v63  ;;  %v2311_v1 = vsub.s32 3, %v3508_v28 }
 0xa20   :  { %2794 = vmatmul.mubr.msk.f32.vlgmr.msra.gmra.mrb[14].mxu1 %vm574_vm4, %v1677_v4  ;;  %v2202_v4 = vld [vmem:[#allocation10 + $0x20] sm:$0xff] }
 0xa21   :  { %2803 = vmatprep.mubr.msk.f32.mxu1 %vm3327_vm1, %v3326_v0  ;;  %v3072_v10 = vpop.eup %3071  ;;  %v2975_v5 = vpack.c.bf16 %v2203_v25, %v2202_v4 }
 0xa22   :  { %v1678_v11 = vmul.f32 %v3072_v10, %v3064_v50  ;;  %v2295_v10 = vld [vmem:[%s3968_s7 + $0x10] sm:$0xff] }
 0xa85   :  { %v1669_v6 = vpop.xlane.xlu1 %1668 }
 0xa86   :  { %3073 = vrcp.f32 %v1669_v6  ;;  %v2205_v6 = vld [vmem:[#allocation10 + $0x38] sm:$0xff] }
 0xa89   :  { %v1828_v8 = vpop.permute.xlu1 %1827 }
 0xa8a   :  { %2802 = vmatpush3.msra.mxu1 %v1828_v8  ;;  %v1672_v9 = vpop.xlane.xlu0 %1671  ;;  %v2293_v8 = vld [vmem:[%s3968_s7] sm:$0xff] }
 0xa8b   :  { %3075 = vrcp.f32 %v1672_v9  ;;  %2952 = vmatprep.subr.bf16.mxu1 %v2951_v7  ;;  %v2294_v9 = vld [vmem:[%s3968_s7 + $0x8] sm:$0xff] }
 0xa8d   :  { %v1904_v17 = vpop.permute.xlu1 %1903 }
 0xa8e   :  { %v1324_v13 = vpop.permute.xlu0 %1323 }
 0xa8f   :  { %1328 = vst.msk [vmem:[#allocation17 + $0x8] sm:$0xff] %vm146_vm0, %v1324_v13  ;;  %2797 = vmatpush3.msra.mxu0 %v1324_v13  ;;  %v2296_v13 = vld [vmem:[%s3968_s7 + $0x18] sm:$0xff] }
 0xa90   :  { %v3074_v16 = vpop.eup %3073  ;;  %2799 = vmatmul.mubr.msk.f32.vlgmr.msra.gmra.mrb[20].mxu0 %vm574_vm4, %v1678_v11  ;;  %2806 = vmatprep.subr.mxu0 %v3326_v0  ;;  %v2983_v11 = vpack.c.bf16 %v2294_v9, %v2293_v8  ;;  %v2987_v14 = vpack.c.bf16 %v2296_v13, %v2295_v10 }
 0xa91   :  { %v1679_v18 = vmul.f32 %v3074_v16, %v3066_v58  ;;  %2807 = vmatpush3.msra.mxu0 %v1904_v17  ;;  %2808 = vmatprep.mubr.msk.f32.mxu0 %vm3327_vm1, %v3326_v0  ;;  %v2198_v58 = vld [vmem:[#allocation10] sm:$0xff]  ;;  %v2298_v16 = vld [vmem:[%s3968_s7 + $0x28] sm:$0xff] }
 0xa92   :  { %v2991_v17 = vpack.c.bf16 %v2298_v16, %v2297_v15 }
 0xa93   :  { %2804 = vmatmul.mubr.msk.f32.vlgmr.msra.gmra.mrb[16].mxu1 %vm574_vm4, %v1679_v18  ;;  %v2299_v18 = vld [vmem:[%s3968_s7 + $0x30] sm:$0xff] }
 0xa94   :  { %2954 = vmatpush3.bf16.msra.mxu1 %v2951_v7  ;;  %v2979_v7 = vpack.c.bf16 %v2205_v6, %v2204_v26 }
 0xa95   :  { %v3076_v20 = vpop.eup %3075  ;;  %2956 = vmatprep.subr.bf16.mxu1 %v2955_v19 }
 0xa96   :  { %v1680_v21 = vmul.f32 %v3076_v20, %v3068_v62  ;;  %v2967_v62 = vpack.c.bf16 %v2199_v59, %v2198_v58 }
 0xa98   :  { %2809 = vmatmul.mubr.msk.f32.vlgmr.msra.gmra.mrb[22].mxu0 %vm574_vm4, %v1680_v21  ;;  %2958 = vmatpush3.bf16.msra.mxu1 %v2955_v19  ;;  %v2300_v19 = vld [vmem:[%s3968_s7 + $0x38] sm:$0xff]  ;;  %v2301_v21 = vld [vmem:[%s3968_s7 + $0x40] sm:$0xff] }
 0xa99   :  { %2960 = vmatprep.subr.bf16.mxu1 %v2959_v24  ;;  %2968 = vmatprep.subr.bf16.mxu0 %v2967_v62  ;;  %v2995_v20 = vpack.c.bf16 %v2300_v19, %v2299_v18  ;;  %v2999_v23 = vpack.c.bf16 %v2302_v22, %v2301_v21 }
 0xa9a   :  { %2970 = vmatpush3.bf16.msra.mxu0 %v2967_v62 }
 0xa9b   :  { %2972 = vmatprep.subr.bf16.mxu0 %v2971_v3 }
 0xa9e   :  { %2974 = vmatpush3.bf16.msra.mxu0 %v2971_v3  ;;  %v2312_v3 = vrot.slane %v3630_v2, %v2311_v1 }
 0xa9f   :  { %2976 = vmatprep.subr.bf16.mxu0 %v2975_v5 }
 0xaa2   :  { %2978 = vmatpush3.bf16.msra.mxu0 %v2975_v5 }
 0xaa3   :  { %2980 = vmatprep.subr.bf16.mxu0 %v2979_v7 }
 0xaa6   :  { %2982 = vmatpush3.bf16.msra.mxu0 %v2979_v7 }
 0xaf3   :  { %v1750_v0 = vpop.f32.mrb[14].mxu1 }
 0xaf4   :  { %v2795_v27 = vpop.f32.mrb[15].mxu1  ;;  %2819 = vmatprep.mubr.msk.f32.mxu1 %vm262_vm2, %v1750_v0  ;;  %v2304_v0 = vld [vmem:[%s3968_s7 + $0x58] sm:$0xff] }
 0xb63   :  { %v1823_v34 = vpop.f32.mrb[20].mxu0 }
 0xb64   :  { %v2800_v35 = vpop.f32.mrb[21].mxu0  ;;  %2820 = vmatmul.mubr.msk.f32.vlgmr.msra.gmra.mrb[18].mxu1 %vm262_vm2, %v1823_v34 }
 0xb65   :  { %2962 = vmatpush3.bf16.msra.mxu1 %v2959_v24  ;;  %v2303_v24 = vld [vmem:[%s3968_s7 + $0x50] sm:$0xff] }
 0xb66   :  { %v1899_v36 = vpop.f32.mrb[16].mxu1  ;;  %2964 = vmatprep.subr.bf16.mxu1 %v2963_v33  ;;  %v3003_v27 = vpack.c.bf16 %v2304_v0, %v2303_v24 }
 0xb67   :  { %v2805_v37 = vpop.f32.mrb[17].mxu1  ;;  %2830 = vmatprep.mubr.msk.f32.mxu1 %vm262_vm2, %v1899_v36 }
 0xb69   :  { %2966 = vmatpush3.bf16.msra.mxu1 %v2963_v33  ;;  %v3007_v33 = vpack.c.bf16 %v2306_v32, %v2305_v30 }
 0xb6a   :  { %2984 = vmatprep.subr.bf16.mxu1 %v2983_v11 }
 0xb6b   :  { %v1975_v38 = vpop.f32.mrb[22].mxu0 }
 0xb6c   :  { %v2810_v39 = vpop.f32.mrb[23].mxu0  ;;  %2831 = vmatmul.mubr.msk.f32.vlgmr.msra.gmra.mrb[18].mxu1 %vm262_vm2, %v1975_v38 }
 0xb6d   :  { %2986 = vmatpush3.bf16.msra.mxu1 %v2983_v11 }
 0xb6e   :  { %2988 = vmatprep.subr.bf16.mxu1 %v2987_v14 }
 0xb71   :  { %2990 = vmatpush3.bf16.msra.mxu1 %v2987_v14 }
 0xb72   :  { %2992 = vmatprep.subr.bf16.mxu1 %v2991_v17 }
 0xb75   :  { %2994 = vmatpush3.bf16.msra.mxu1 %v2991_v17 }
 0xb76   :  { %2996 = vmatprep.subr.bf16.mxu1 %v2995_v20 }
 0xb79   :  { %2998 = vmatpush3.bf16.msra.mxu1 %v2995_v20 }
 0xb7a   :  { %3000 = vmatprep.subr.bf16.mxu1 %v2999_v23 }
 0xb7d   :  { %3002 = vmatpush3.bf16.msra.mxu1 %v2999_v23 }
 0xb7e   :  { %3004 = vmatprep.subr.bf16.mxu1 %v3003_v27 }
 0xb81   :  { %3006 = vmatpush3.bf16.msra.mxu1 %v3003_v27 }
 0xb82   :  { %3008 = vmatprep.subr.bf16.mxu1 %v3007_v33 }
 0xb85   :  { %3010 = vmatpush3.bf16.msra.mxu1 %v3007_v33 }
 0xc3f   :  { %v2832_v42 = vpop.f32.mrb[18].mxu1 }
 0xc40   :  { %v3017_v43 = vadd.f32 %v2832_v42, %v2072_v41  ;;  %v2147_v44 = vpop.f32.mrb[19].mxu1  ;;  %v2187_v42 = vrot.slane %v3630_v2, %v2186_v40 }
 0xc41   :  { %v3018_v45 = vadd.f32 %v2147_v44, %v2072_v41  ;;  %v2192_v41 = vsub.s32 7, %v3508_v28 }
 0xc42   :  { %v2161_v46 = vsel %vm146_vm0, %v3017_v43, 0.0 }
 0xc43   :  { %2162 = vadd.xlane.f32.xlu1 %v2161_v46  ;;  %v2158_v47 = vsel %vm146_vm0, %v3018_v45, 0.0 }
 0xc44   :  { %2159 = vadd.xlane.f32.xlu0 %v2158_v47 }
 0xcd0   :  { %v2163_v48 = vpop.xlane.xlu1 %2162 }
 0xcd1   :  { %v2165_v49 = vmul.f32 0.015625, %v2163_v48  ;;  %v2160_v50 = vpop.xlane.xlu0 %2159 }
 0xcd2   :  { %v2164_v51 = vmul.f32 0.015625, %v2160_v50 }
 0xcd3   :  { %v3778_v52 = vsub.f32 %v3017_v43, %v2165_v49 }
 0xcd4   :  { %v3780_v53 = vsub.f32 %v3018_v45, %v2164_v51  ;;  %v2193_v45 = vrot.slane %v3630_v2, %v2192_v41 }
 0xcd5   :  { %v2169_v56 = vmul.f32 %v3778_v52, %v3778_v52 }
 0xcd6   :  { %v2168_v54 = vmul.f32 %v3780_v53, %v3780_v53 }
 0xcd7   :  { %v2173_v57 = vsel %vm146_vm0, %v2169_v56, 0.0  ;;  %v2209_v56 = vrot.slane %v3687_v12, %v3521_v31 }
 0xcd8   :  { %v2170_v55 = vsel %vm146_vm0, %v2168_v54, 0.0 }
 0xcd9   :  { %2171 = vadd.xlane.f32.xlu0 %v2170_v55 }
 0xcdd   :  { %2174 = vadd.xlane.f32.xlu0 %v2173_v57 }
 0xd66   :  { %v2172_v34 = vpop.xlane.xlu0 %2171 }
 0xd67   :  { %v2176_v35 = vmul.f32 0.015625, %v2172_v34 }
 0xd69   :  { %v2178_v36 = vadd.f32 1e-05, %v2176_v35 }
 0xd6a   :  { %v2175_v37 = vpop.xlane.xlu0 %2174 }
 0xd6b   :  { %3077 = vrsqrt.f32 %v2178_v36  ;;  %v2177_v38 = vmul.f32 0.015625, %v2175_v37 }
 0xd6d   :  { %v2179_v39 = vadd.f32 1e-05, %v2177_v38 }
 0xd6f   :  { %3079 = vrsqrt.f32 %v2179_v39 }
 0xd75   :  { %v3078_v43 = vpop.eup %3077 }
 0xd76   :  { %v2182_v44 = vmul.f32 %v3078_v43, %v3780_v53  ;;  %v2307_v53 = vld [vmem:[%s3968_s7 + $0x70] sm:$0xff] }
 0xd78   :  { %v2188_v46 = vmul.f32 %v2187_v42, %v2182_v44 }
 0xd79   :  { %v3080_v47 = vpop.eup %3079 }
 0xd7a   :  { %v2183_v48 = vmul.f32 %v3080_v47, %v3778_v52  ;;  %v2194_v49 = vadd.f32 %v2193_v45, %v2188_v46  ;;  %v2308_v52 = vld [vmem:[%s3968_s7 + $0x78] sm:$0xff]  ;;  %s3330_s7 = smov [#allocation12]  }
 0xd7b   :  { %s2447_s18 = sshll.u32 %s3330_s7, 4  ;;  %s2448_s18 = int_to_ptr.vmem [resolvable:$true] %s2447_s18 }
 0xd7c   :  { %v2189_v50 = vmul.f32 %v2187_v42, %v2183_v48  ;;  %v3837_v51 = vadd.f32 %v2194_v49, %v3667_v60  ;;  %v3011_v60 = vpack.c.bf16 %v2308_v52, %v2307_v53  ;;  %s3195_s21 = scalar_lea.vmem %s2448_s18, 256  ;;  %p3200_p13 = scmp.lt.s32.totalorder %s2448_s18, %s2448_s18 }
 0xd7d   :  { %p3196_p12 = scmp.ne.s32.totalorder %s2448_s18, %s3195_s21  ;;  %p3201_p0 = scmp.lt.s32.totalorder %s3195_s21, %s3195_s21 }
 0xd7e   :  { %v2195_v54 = vadd.f32 %v2193_v45, %v2189_v50  ;;  %2849 = vmatprep.mubr.msk.f32.mxu0 %vm146_vm0, %v3837_v51  ;;  %3012 = vmatprep.subr.bf16.mxu1 %v3011_v60 }
 0xd7f   :  { %3014 = vmatpush3.bf16.msra.mxu1 %v3011_v60  ;;  %p3202_p1 = por %p3201_p0, %p3200_p13 }
 0xd80   :  { %v3842_v55 = vadd.f32 %v2195_v54, %v3670_v61 }
 0xd81   :  { %p3203_p2 = pnand %p3202_p1, %p3196_p12 }
 0xd82   :  { %2850 = vmatmul.mubr.msk.f32.vlgmr.msra.gmra.mrb[24].mxu0 %vm146_vm0, %v3842_v55 }
 0xe55   :  { %v2851_v57 = vpop.f32.mrb[24].mxu0 }
 0xe56   :  { %v2288_v61 = vadd.f32 %v2851_v57, %v2209_v56  ;;  %v2282_v58 = vpop.f32.mrb[25].mxu0 }
 0xe57   :  { %v2283_v59 = vadd.f32 %v2282_v58, %v2209_v56 }
 0xe58   :  { %v2292_v63 = vmax.f32 %v2288_v61, 0.0 }
 0xe59   :  { %v2291_v62 = vmax.f32 %v2283_v59, 0.0 }
 0xe5b   :  { %2884 = vmatprep.mubr.f32.mxu1 %v2291_v62 }
 0xe5c   :  { %2885 = vmatmul.mubr.f32.vlgmr.msra.gmra.mrb[20].mxu1 %v2292_v63 }
 0xf2f   :  { %v2886_v4 = vpop.f32.mrb[20].mxu1 }
 0xf30   :  { %v2385_v25 = vadd.f32 %v2886_v4, %v2312_v3  ;;  %v2379_v5 = vpop.f32.mrb[21].mxu1 }
 0xf31   :  { %v2380_v26 = vadd.f32 %v2379_v5, %v2312_v3 }
 0xf32   :  { %v2391_v6 = vsel %vm146_vm0, %v2385_v25, 0.0 }
 0xf33   :  { %2392 = vadd.xlane.f32.xlu0 %v2391_v6  ;;  %v2388_v12 = vsel %vm146_vm0, %v2380_v26, 0.0 }
 0xf34   :  { %2389 = vadd.xlane.f32.xlu1 %v2388_v12 }
 0xfc0   :  { %v2393_v7 = vpop.xlane.xlu0 %2392 }
 0xfc1   :  { %v2395_v8 = vmul.f32 0.015625, %v2393_v7  ;;  %v2390_v9 = vpop.xlane.xlu1 %2389 }
 0xfc2   :  { %v2394_v10 = vmul.f32 0.015625, %v2390_v9 }
 0xfc3   :  { %v3858_v11 = vsub.f32 %v2385_v25, %v2395_v8 }
 0xfc4   :  { %v3860_v13 = vsub.f32 %v2380_v26, %v2394_v10 }
 0xfc5   :  { %v2399_v28 = vmul.f32 %v3858_v11, %v3858_v11 }
 0xfc6   :  { %v2398_v2 = vmul.f32 %v3860_v13, %v3860_v13 }
 0xfc7   :  { %v2403_v14 = vsel %vm146_vm0, %v2399_v28, 0.0 }
 0xfc8   :  { %2404 = vadd.xlane.f32.xlu0 %v2403_v14  ;;  %v2400_v15 = vsel %vm146_vm0, %v2398_v2, 0.0 }
 0xfc9   :  { %2401 = vadd.xlane.f32.xlu1 %v2400_v15 }
 0xfca   :  { %3206 = shalt.err (!%p3203_p2)
}
 0xfcb   :  { %s3207_s22 = scalar_lea.hbm %s3972_s11, 256 }
 0xfcc   :  { %p3208_p3 = scmp.ne.s32.totalorder %s3972_s11, %s3207_s22  ;;  %p3211_p4 = scmp.lt.u32.totalorder %s3207_s22, %s3972_s11 }
 0xfce   :  { %p3213_p5 = pnand %p3211_p4, %p3208_p3 }
 0xfd0   :  { %3216 = shalt.err (!%p3213_p5)
}
 0xfd1   :  { %2453 = dma.vmem_to_hbm [thread:$0]  %s2448_s18, 256, %s3972_s11, [#allocation13], %s3319_s25, %s3319_s25, %s3320_s26  }
 0xfd2   :  { %s3217_s15 = scalar_lea.vmem %s3868_s20, 256  ;;  %p3222_p7 = scmp.lt.s32.totalorder %s3868_s20, %s3868_s20 }
 0xfd3   :  { %p3218_p6 = scmp.ne.s32.totalorder %s3868_s20, %s3217_s15  ;;  %p3223_p8 = scmp.lt.s32.totalorder %s3217_s15, %s3217_s15 }
 0xfd5   :  { %p3224_p9 = por %p3223_p8, %p3222_p7 }
 0xfd7   :  { %p3225_p10 = pnand %p3224_p9, %p3218_p6 }
 0xfd9   :  { %3228 = shalt.err (!%p3225_p10)
}
 0xfda   :  { %s3229_s6 = scalar_lea.hbm %s3974_s13, 256 }
 0xfdb   :  { %p3230_p11 = scmp.ne.s32.totalorder %s3974_s13, %s3229_s6  ;;  %p3233_p12 = scmp.lt.u32.totalorder %s3229_s6, %s3974_s13 }
 0xfdd   :  { %p3235_p13 = pnand %p3233_p12, %p3230_p11 }
 0xfdf   :  { %3238 = shalt.err (!%p3235_p13)
}
 0xfe0   :  { %2477 = dma.vmem_to_hbm [thread:$0]  %s3868_s20, 256, %s3974_s13, [#allocation16], %s3319_s25, %s3319_s25, %s3320_s26  }
 0xfe1   :  { %s3332_s7 = smov [#allocation14]  }
 0xfe2   :  { %s2459_s18 = sshll.u32 %s3332_s7, 4  ;;  %s2460_s18 = int_to_ptr.vmem [resolvable:$true] %s2459_s18 }
 0xfe3   :  { %s3239_s19 = scalar_lea.vmem %s2460_s18, 256  ;;  %p3244_p1 = scmp.lt.s32.totalorder %s2460_s18, %s2460_s18 }
 0xfe4   :  { %p3240_p0 = scmp.ne.s32.totalorder %s2460_s18, %s3239_s19  ;;  %p3245_p2 = scmp.lt.s32.totalorder %s3239_s19, %s3239_s19 }
 0xfe6   :  { %p3246_p3 = por %p3245_p2, %p3244_p1 }
 0xfe8   :  { %p3247_p4 = pnand %p3246_p3, %p3240_p0 }
 0xfea   :  { %3250 = shalt.err (!%p3247_p4)
}
 0xfeb   :  { %s3251_s16 = scalar_lea.hbm %s3973_s12, 256 }
 0xfec   :  { %p3252_p5 = scmp.ne.s32.totalorder %s3973_s12, %s3251_s16  ;;  %p3255_p6 = scmp.lt.u32.totalorder %s3251_s16, %s3973_s12 }
 0xfee   :  { %p3257_p7 = pnand %p3255_p6, %p3252_p5 }
 0xff0   :  { %3260 = shalt.err (!%p3257_p7)
}
 0xff1   :  { %2465 = dma.vmem_to_hbm [thread:$0]  %s2460_s18, 256, %s3973_s12, [#allocation13], %s3319_s25, %s3319_s25, %s3320_s26  }
 0xff2   :  { %s3333_s27 = smov [#allocation17]  }
 0xff3   :  { %s2483_s29 = sshll.u32 %s3333_s27, 4  ;;  %s2484_s29 = int_to_ptr.vmem [resolvable:$true] %s2483_s29 }
 0xff4   :  { %s3261_s4 = scalar_lea.vmem %s2484_s29, 256  ;;  %p3266_p9 = scmp.lt.s32.totalorder %s2484_s29, %s2484_s29 }
 0xff5   :  { %p3262_p8 = scmp.ne.s32.totalorder %s2484_s29, %s3261_s4  ;;  %p3267_p10 = scmp.lt.s32.totalorder %s3261_s4, %s3261_s4 }
 0xff7   :  { %p3268_p11 = por %p3267_p10, %p3266_p9 }
 0xff9   :  { %p3269_p12 = pnand %p3268_p11, %p3262_p8 }
 0xffb   :  { %3272 = shalt.err (!%p3269_p12)
}
 0xffc   :  { %s3273_s28 = scalar_lea.hbm %s3975_s14, 256 }
 0xffd   :  { %p3274_p13 = scmp.ne.s32.totalorder %s3975_s14, %s3273_s28  ;;  %p3277_p0 = scmp.lt.u32.totalorder %s3273_s28, %s3975_s14 }
 0xfff   :  { %p3279_p1 = pnand %p3277_p0, %p3274_p13 }
0x1001   :  { %3282 = shalt.err (!%p3279_p1)
}
0x1002   :  { %2489 = dma.vmem_to_hbm [thread:$0]  %s2484_s29, 256, %s3975_s14, [#allocation16], %s3319_s25, %s3319_s25, %s3320_s26  }
0x1003   :  { %v112_v22 = vld [vmem:[%s3970_s9 + $0x8] sm:$0x3]  ;;  %s3334_s14 = smov [#allocation11]  }
0x1004   :  { %v2417_v23 = vrot.slane %v112_v22, %v3515_v29  ;;  %v2423_v30 = vrot.slane %v112_v22, %v3521_v31  ;;  %s2435_s7 = sshll.u32 %s3334_s14, 4  ;;  %s2436_s7 = int_to_ptr.vmem [resolvable:$true] %s2435_s7 }
0x1005   :  { %s3283_s9 = scalar_lea.vmem %s2436_s7, 256  ;;  %p3288_p3 = scmp.lt.s32.totalorder %s2436_s7, %s2436_s7 }
0x1006   :  { %p3284_p2 = scmp.ne.s32.totalorder %s2436_s7, %s3283_s9  ;;  %p3289_p4 = scmp.lt.s32.totalorder %s3283_s9, %s3283_s9 }
0x1008   :  { %p3290_p5 = por %p3289_p4, %p3288_p3 }
0x100a   :  { %p3291_p6 = pnand %p3290_p5, %p3284_p2 }
0x1055   :  { %v2405_v16 = vpop.xlane.xlu0 %2404 }
0x1056   :  { %v2407_v17 = vmul.f32 0.015625, %v2405_v16  ;;  %v2402_v18 = vpop.xlane.xlu1 %2401 }
0x1057   :  { %v2406_v19 = vmul.f32 0.015625, %v2402_v18 }
0x1058   :  { %v2409_v20 = vadd.f32 1e-05, %v2407_v17 }
0x1059   :  { %v2408_v21 = vadd.f32 1e-05, %v2406_v19 }
0x105a   :  { %3081 = vrsqrt.f32 %v2409_v20 }
0x105b   :  { %3083 = vrsqrt.f32 %v2408_v21 }
0x1064   :  { %v3082_v24 = vpop.eup %3081 }
0x1065   :  { %v3084_v0 = vpop.eup %3083  ;;  %v2413_v27 = vmul.f32 %v3082_v24, %v3858_v11 }
0x1066   :  { %v2412_v32 = vmul.f32 %v3084_v0, %v3860_v13 }
0x1067   :  { %v2419_v33 = vmul.f32 %v2417_v23, %v2413_v27 }
0x1068   :  { %v2418_v34 = vmul.f32 %v2417_v23, %v2412_v32 }
0x1069   :  { %v2425_v35 = vadd.f32 %v2423_v30, %v2419_v33 }
0x106a   :  { %v2424_v36 = vadd.f32 %v2423_v30, %v2418_v34 }
0x106b   :  { %v2427_v37 = vadd.f32 %v2425_v35, %v3842_v55 }
0x106c   :  { %v2426_v38 = vadd.f32 %v2424_v36, %v3837_v51 }
0x106d   :  { %2429 = vst.msk [vmem:[#allocation11 + $0x8] sm:$0xff] %vm146_vm0, %v2427_v37 }
0x106e   :  { %2428 = vst.msk [vmem:[#allocation11] sm:$0xff] %vm146_vm0, %v2426_v38 }
0x106f   :  { %3294 = shalt.err (!%p3291_p6)
}
0x1070   :  { %s3295_s21 = scalar_lea.hbm %s3971_s10, 256 }
0x1071   :  { %p3296_p7 = scmp.ne.s32.totalorder %s3971_s10, %s3295_s21  ;;  %p3299_p8 = scmp.lt.u32.totalorder %s3295_s21, %s3971_s10 }
0x1073   :  { %p3301_p9 = pnand %p3299_p8, %p3296_p7 }
0x1075   :  { %3304 = shalt.err (!%p3301_p9)
}
0x1076   :  { %2441 = dma.vmem_to_hbm [thread:$0]  %s2436_s7, 256, %s3971_s10, [#allocation4], %s3319_s25, %s3319_s25, %s3320_s26  }
0x1077   :  { %3311 = dma.done.wait [#allocation4], 256  }
0x1078   :  { %3312 = vsyncadd [#allocation4], 4294967040 }
0x1079   :  { %3313 = dma.done.wait [#allocation13], 512  }
0x107a   :  { %3314 = vsyncadd [#allocation13], 4294966784 }
0x107b   :  { %3315 = dma.done.wait [#allocation16], 512  }
0x107c   :  { %3316 = vsyncadd [#allocation16], 4294966784 }
0x107d   :  { %2505 = vsyncpa [#allocation3], 1 }
0x107e   :  { %2506 = vsyncpa [#allocation6], 1 }
0x107f   :  { %2507 = vsyncpa [#allocation9], 1 }
0x1080   :  { %2508 = vsyncpa [#allocation4], 1 }
0x1081   :  { %2509 = vsyncpa [#allocation13], 1 }
0x1082   :  { %2510 = vsyncpa [#allocation16], 1 }

</bundles_post_ra>
